<compile_context>
chip_gen: v6e
topology: v6e:2x2x1
jax: 0.10.0
libtpu: 0.0.40
codegen_flags: <defaults>
</compile_context>

<pallas_src>
import math
import numpy as np
import jax
import jax.numpy as jnp
from jax.experimental import pallas as pl
from jax.experimental.pallas import tpu as pltpu

# ----- model config (small, consistent with LMConfig semantics) -----
B, S, D = 2, 8, 32          # batch, seq, model dim
NH, NKV = 4, 2              # n_heads, n_kv_heads
HD = D // NH                # head_dim = 8
NREP = NH // NKV            # GQA repeat factor
MULTIPLE_OF = 32
EPS = 1e-5
NEG = -1e30                 # finite stand-in for the -inf causal mask (identical softmax result)
BS = B * S

HI = jax.lax.Precision.HIGHEST   # exact-f32 matmul where numerics matter


def _ffn_hidden(dim, multiple_of):
    h = 4 * dim
    h = int(2 * h / 3)
    return multiple_of * ((h + multiple_of - 1) // multiple_of)


HID = _ffn_hidden(D, MULTIPLE_OF)   # 96

NQ = NH * HD                        # 32  (q width)
NK = NKV * HD                       # 16  (k/v width)
QKV_W = 2 * NQ + 2 * NK + NK        # 112 (fused [wq | wq@Rq | wk | wk@Rk | wv])


# ---------------------------------------------------------------------------
# Kernel
# ---------------------------------------------------------------------------
def _rmsnorm(x, w):
    ms = jnp.mean(x * x, axis=-1, keepdims=True)
    return x * jax.lax.rsqrt(ms + EPS) * w


def _qkT(a, b):
    # (S, d) x (S, d) -> (S, S), contracting last dims; exact f32 (feeds the selective mask)
    return jax.lax.dot_general(a, b, (((1,), (1,)), ((), ())),
                               precision=HI, preferred_element_type=jnp.float32)


def transformer_block_kernel(x_ref, wqkv_ref, wo_ref, w13_ref, w2_ref,
                             norm_ref, rope_ref, out_ref):
    x = x_ref[...]                                 # (BS, D): both batch elements stacked
    an_w = norm_ref[0:1, :]                        # attention-norm weight (1, D)
    fn_w = norm_ref[1:2, :]                        # ffn-norm weight       (1, D)
    cos = rope_ref[0]                              # (BS, NQ); K uses the leading NK lanes
    sin = rope_ref[1]

    # ---------- constant helper matrices (built once for the whole batch, pure VPU) ----------
    row = jax.lax.broadcasted_iota(jnp.int32, (S, S), 0)
    col = jax.lax.broadcasted_iota(jnp.int32, (S, S), 1)
    causal = jnp.where(col > row, NEG, 0.0).astype(jnp.float32)
    shift_down = (row == col + 1).astype(jnp.float32)        # (L @ M)[i] = M[i-1], row 0 -> 0
    cum_tri = (row <= col).astype(jnp.float32)                # M @ T == cumsum(M, axis=-1)
    sel_keep = ((col > 0) & (row != col)).astype(jnp.float32) # zero first column & diagonal

    # ---------- attention pre-norm (RMSNorm, f32) ----------
    xn = _rmsnorm(x, an_w)                                    # (BS, D)

    # ---------- fused QKV (+ pre-rotated) projection: ONE bf16 MXU matmul ----------
    qkv = jnp.dot(xn.astype(jnp.bfloat16), wqkv_ref[...],
                  preferred_element_type=jnp.float32)         # (BS, QKV_W) f32 accum
    q_a = qkv[:, 0:NQ]                                        # xn @ (Wq/sqrt(hd))
    q_b = qkv[:, NQ:2 * NQ]                                   # xn @ (Wq/sqrt(hd) @ Rq)
    k_a = qkv[:, 2 * NQ:2 * NQ + NK]                          # xn @ Wk
    k_b = qkv[:, 2 * NQ + NK:2 * NQ + 2 * NK]                 # xn @ (Wk @ Rk)
    v = qkv[:, 2 * NQ + 2 * NK:]                              # xn @ Wv          (BS, NK)

    # ---------- rotary embedding: pure VPU FMA (rotate-half folded into weights) ----------
    xq = q_a * cos + q_b * sin                                # (BS, NQ), already /sqrt(hd)
    xk = k_a * cos[:, :NK] + k_b * sin[:, :NK]                # (BS, NK)

    # ---------- per-(batch, head) masked QK^T, stacked along sublanes -> (B*NH*S, S) ----------
    # GQA: head h uses kv head h // NREP.  Selective mask (head 0) computed per batch, exact f32.
    blocks = []
    for b in range(B):
        r0 = b * S
        xq_b = xq[r0:r0 + S]                                  # (S, NQ)
        xk_b = xk[r0:r0 + S]                                  # (S, NK)
        head_logits = [
            _qkT(xq_b[:, h * HD:(h + 1) * HD],
                 xk_b[:, (h // NREP) * HD:(h // NREP + 1) * HD]) + causal
            for h in range(NH)]                               # NH x (S, S)
        s0 = jnp.maximum(head_logits[0], 0.0) * sel_keep      # relu, S[...,0]=0, (1-eye)*S
        rolled = jnp.dot(shift_down, s0, precision=HI,
                         preferred_element_type=jnp.float32)  # roll rows down; row 0 = 0
        sel = jnp.dot(rolled, cum_tri, precision=HI,
                      preferred_element_type=jnp.float32)     # cumsum over last dim
        blocks.extend([hl - sel for hl in head_logits])       # broadcast sel across heads
    logits = jnp.concatenate(blocks, axis=0)                  # (B*NH*S, S), (b, h) ordering

    # ---------- batched softmax (one max/exp/sum/div for all batches & heads) ----------
    m = jnp.max(logits, axis=-1, keepdims=True)
    e = jnp.exp(logits - m)
    p = e / jnp.sum(e, axis=-1, keepdims=True)                # (B*NH*S, S) f32

    # ---------- per-batch stacked P @ V; head h's result is the diagonal block ----------
    attn_rows = []
    for b in range(B):
        p_b = p[b * NH * S:(b + 1) * NH * S]                  # (NH*S, S) contiguous slice
        v_b = v[b * S:(b + 1) * S]                            # (S, NK)
        v_rep = jnp.concatenate(
            [v_b[:, (h // NREP) * HD:(h // NREP + 1) * HD] for h in range(NH)], axis=1)  # (S, NQ)
        pv = jnp.dot(p_b, v_rep, precision=HI,
                     preferred_element_type=jnp.float32)      # (NH*S, NQ)
        attn_rows.append(jnp.concatenate(
            [pv[h * S:(h + 1) * S, h * HD:(h + 1) * HD] for h in range(NH)], axis=1))     # (S, NQ)
    attn = jnp.concatenate(attn_rows, axis=0)                 # (BS, NQ)

    # ---------- output projection (bf16 MXU) + residual ----------
    h_res = x + jnp.dot(attn.astype(jnp.bfloat16), wo_ref[...],
                        preferred_element_type=jnp.float32)

    # ---------- SwiGLU FFN with fused w1|w3 (bf16 MXU) + residual ----------
    hn = _rmsnorm(h_res, fn_w)
    g = jnp.dot(hn.astype(jnp.bfloat16), w13_ref[...],
                preferred_element_type=jnp.float32)           # (BS, 2*HID)
    g1 = g[:, :HID]
    g3 = g[:, HID:]
    act = g1 * jax.nn.sigmoid(g1) * g3                        # silu(w1 x) * (w3 x), f32
    ffn = jnp.dot(act.astype(jnp.bfloat16), w2_ref[...],
                  preferred_element_type=jnp.float32)
    out_ref[...] = h_res + ffn


# ---------------------------------------------------------------------------
# Glue / wrapper
# ---------------------------------------------------------------------------
def _rotate_half_matrix(n_heads, hd):
    # column j<hd/2 gets -x[2j+1]; column hd/2+m gets x[2m]  (matches torch rotate_half)
    R = np.zeros((n_heads * hd, n_heads * hd), dtype=np.float32)
    half = hd // 2
    for h in range(n_heads):
        o = h * hd
        for j in range(half):
            R[o + 2 * j + 1, o + j] = -1.0
            R[o + 2 * j, o + half + j] = 1.0
    return jnp.asarray(R)


def transformer_block(x, p, pos_cos, pos_sin):
    # host-side prep: rotary tables in flattened-head layout, tiled over the batch
    cos_hd = jnp.repeat(pos_cos, 2, axis=-1)        # (S, HD) : repeat_interleave(2, -1)
    sin_hd = jnp.repeat(pos_sin, 2, axis=-1)
    cos_full = jnp.tile(cos_hd, (B, NH))            # (B*S, NQ)
    sin_full = jnp.tile(sin_hd, (B, NH))
    rope = jnp.stack([cos_full, sin_full], axis=0)  # (2, B*S, NQ) f32

    # fold 1/sqrt(head_dim) + rotate-half (signed permutation) into the Q projection weights,
    # fuse QKV into one slab
    scale = 1.0 / math.sqrt(HD)
    rq = _rotate_half_matrix(NH, HD)
    rk = _rotate_half_matrix(NKV, HD)
    wq_s = p["wq_t"] * scale
    wq_rot = jnp.dot(wq_s, rq, precision=HI)
    wk_rot = jnp.dot(p["wk_t"], rk, precision=HI)
    wqkv = jnp.concatenate([wq_s, wq_rot, p["wk_t"], wk_rot, p["wv_t"]],
                           axis=1).astype(jnp.bfloat16)              # (D, QKV_W)
    wo = p["wo_t"].astype(jnp.bfloat16)                              # (NQ, D)
    w13 = jnp.concatenate([p["w1_t"], p["w3_t"]], axis=1).astype(jnp.bfloat16)   # (D, 2*HID)
    w2 = p["w2_t"].astype(jnp.bfloat16)                              # (HID, D)
    norms = jnp.concatenate([p["attn_norm_w"], p["ffn_norm_w"]], axis=0)         # (2, D) f32

    # single invocation, no grid: all operands are tiny and live whole in VMEM
    f = pl.pallas_call(
        transformer_block_kernel,
        out_shape=jax.ShapeDtypeStruct((BS, D), jnp.float32),
    )
    out = f(x.reshape(BS, D), wqkv, wo, w13, w2, norms, rope)
    return out.reshape(B, S, D)


def init_params(key):
    ks = jax.random.split(key, 7)
    sc = 0.05
    p = {
        "wq_t": jax.random.normal(ks[0], (D, NQ), jnp.float32) * sc,
        "wk_t": jax.random.normal(ks[1], (D, NK), jnp.float32) * sc,
        "wv_t": jax.random.normal(ks[2], (D, NK), jnp.float32) * sc,
        "wo_t": jax.random.normal(ks[3], (NQ, D), jnp.float32) * sc,
        "w1_t": jax.random.normal(ks[4], (D, HID), jnp.float32) * sc,
        "w2_t": jax.random.normal(ks[5], (HID, D), jnp.float32) * sc,
        "w3_t": jax.random.normal(ks[6], (D, HID), jnp.float32) * sc,
        "attn_norm_w": jnp.ones((1, D), jnp.float32),
        "ffn_norm_w": jnp.ones((1, D), jnp.float32),
    }
    return p


# ---------------------------------------------------------------------------
# Pure-JAX reference (mirrors the PyTorch forward exactly, full f32)
# ---------------------------------------------------------------------------
def reference(x, p, pos_cos, pos_sin):
    def rms(t, w):
        return t * jax.lax.rsqrt(jnp.mean(t * t, -1, keepdims=True) + EPS) * w[0]

    def rot_half(t):
        a = t[..., ::2]
        b = t[..., 1::2]
        return jnp.concatenate([-b, a], axis=-1)

    xn = rms(x, p["attn_norm_w"])
    xq = (xn @ p["wq_t"]).reshape(B, S, NH, HD)
    xk = (xn @ p["wk_t"]).reshape(B, S, NKV, HD)
    xv = (xn @ p["wv_t"]).reshape(B, S, NKV, HD)
    cos_r = jnp.repeat(pos_cos, 2, axis=-1)[None, :, None, :]
    sin_r = jnp.repeat(pos_sin, 2, axis=-1)[None, :, None, :]
    xq = xq * cos_r + rot_half(xq) * sin_r
    xk = xk * cos_r + rot_half(xk) * sin_r
    xk = jnp.repeat(xk, NREP, axis=2)
    xv = jnp.repeat(xv, NREP, axis=2)
    xq, xk, xv = (t.transpose(0, 2, 1, 3) for t in (xq, xk, xv))
    logits = jnp.einsum('bhqd,bhkd->bhqk', xq, xk) / math.sqrt(HD)
    mask = jnp.where(np.triu(np.ones((S, S)), k=1) > 0, -jnp.inf, 0.0).astype(jnp.float32)
    logits = logits + mask[None, None]
    Ssel = jax.nn.relu(logits[:, 0])
    Ssel = Ssel.at[..., 0].set(0.0)
    Ssel = (1.0 - jnp.eye(S))[None] * Ssel
    Ssel = jnp.roll(Ssel, 1, axis=-2)
    Ssel = Ssel.at[..., 0, :].set(0.0)
    sel = jnp.cumsum(Ssel, axis=-1)
    logits = logits - sel[:, None]
    scores = jax.nn.softmax(logits, axis=-1)
    out = jnp.einsum('bhqk,bhkd->bhqd', scores, xv)
    out = out.transpose(0, 2, 1, 3).reshape(B, S, NQ)
    h = x + out @ p["wo_t"]
    hn = rms(h, p["ffn_norm_w"])
    ff = (jax.nn.silu(hn @ p["w1_t"]) * (hn @ p["w3_t"])) @ p["w2_t"]
    return h + ff


# ---------------------------------------------------------------------------
if __name__ == "__main__":
    key = jax.random.PRNGKey(0)
    kx, kp = jax.random.split(key)
    x = jax.random.normal(kx, (B, S, D), jnp.float32)
    params = init_params(kp)

    pos = np.arange(S, dtype=np.float32)
    inv_freq = 1.0 / (10000.0 ** (np.arange(0, HD, 2, dtype=np.float32) / HD))
    ang = np.outer(pos, inv_freq)                       # (S, HD//2)
    pos_cos = jnp.asarray(np.cos(ang), jnp.float32)
    pos_sin = jnp.asarray(np.sin(ang), jnp.float32)

    out = jax.block_until_ready(transformer_block(x, params, pos_cos, pos_sin))
    with jax.default_matmul_precision("highest"):       # exact-f32 reference (PyTorch semantics)
        ref = jax.block_until_ready(reference(x, params, pos_cos, pos_sin))

    assert out.shape == (B, S, D)
    # tolerance covers bf16 operands on the projection matmuls (f32 accumulation)
    np.testing.assert_allclose(np.asarray(out), np.asarray(ref), rtol=2e-3, atol=3e-3)
    print("KERNEL_OK")
</pallas_src>

<mosaic_0001>
module attributes {stable_mosaic.version = 11 : i64} {
  func.func @transformer_block_kernel(%arg0: memref<16x32xf32, #tpu.memory_space<vmem>>, %arg1: memref<32x112xbf16, #tpu.memory_space<vmem>>, %arg2: memref<32x32xbf16, #tpu.memory_space<vmem>>, %arg3: memref<32x192xbf16, #tpu.memory_space<vmem>>, %arg4: memref<96x32xbf16, #tpu.memory_space<vmem>>, %arg5: memref<2x32xf32, #tpu.memory_space<vmem>>, %arg6: memref<2x16x32xf32, #tpu.memory_space<vmem>>, %arg7: memref<16x32xf32, #tpu.memory_space<vmem>>) attributes {dimension_semantics = [], scalar_prefetch = 0 : i64, scratch_operands = 0 : i64, tpu.core_type = #tpu.core_type<tc>} {
    %c0 = arith.constant 0 : index
    %c0_0 = arith.constant 0 : index
    %0 = vector.load %arg0[%c0, %c0_0] : memref<16x32xf32, #tpu.memory_space<vmem>>, vector<16x32xf32>
    %c0_1 = arith.constant 0 : index
    %c0_2 = arith.constant 0 : index
    %1 = vector.load %arg5[%c0_1, %c0_2] : memref<2x32xf32, #tpu.memory_space<vmem>>, vector<1x32xf32>
    %c1 = arith.constant 1 : index
    %c0_3 = arith.constant 0 : index
    %2 = vector.load %arg5[%c1, %c0_3] : memref<2x32xf32, #tpu.memory_space<vmem>>, vector<1x32xf32>
    %c0_4 = arith.constant 0 : index
    %c0_5 = arith.constant 0 : index
    %c0_6 = arith.constant 0 : index
    %3 = vector.load %arg6[%c0_4, %c0_5, %c0_6] : memref<2x16x32xf32, #tpu.memory_space<vmem>>, vector<1x16x32xf32>
    %4 = vector.shape_cast %3 : vector<1x16x32xf32> to vector<16x32xf32>
    %c1_7 = arith.constant 1 : index
    %c0_8 = arith.constant 0 : index
    %c0_9 = arith.constant 0 : index
    %5 = vector.load %arg6[%c1_7, %c0_8, %c0_9] : memref<2x16x32xf32, #tpu.memory_space<vmem>>, vector<1x16x32xf32>
    %6 = vector.shape_cast %5 : vector<1x16x32xf32> to vector<16x32xf32>
    %7 = tpu.iota {dimensions = array<i32: 0>} : vector<8x8xi32>
    %8 = tpu.iota {dimensions = array<i32: 1>} : vector<8x8xi32>
    %9 = arith.cmpi sgt, %8, %7 : vector<8x8xi32>
    %cst = arith.constant -1.000000e+30 : f32
    %cst_10 = arith.constant 0.000000e+00 : f32
    %10 = vector.broadcast %cst : f32 to vector<8x8xf32>
    %11 = vector.broadcast %cst_10 : f32 to vector<8x8xf32>
    %12 = arith.select %9, %10, %11 : vector<8x8xi1>, vector<8x8xf32>
    %c1_i32 = arith.constant 1 : i32
    %13 = vector.broadcast %c1_i32 : i32 to vector<8x8xi32>
    %14 = arith.addi %8, %13 : vector<8x8xi32>
    %15 = arith.cmpi eq, %7, %14 : vector<8x8xi32>
    %16 = arith.extui %15 : vector<8x8xi1> to vector<8x8xi32>
    %17 = arith.sitofp %16 : vector<8x8xi32> to vector<8x8xf32>
    %18 = arith.cmpi sle, %7, %8 : vector<8x8xi32>
    %19 = arith.extui %18 : vector<8x8xi1> to vector<8x8xi32>
    %20 = arith.sitofp %19 : vector<8x8xi32> to vector<8x8xf32>
    %c0_i32 = arith.constant 0 : i32
    %21 = vector.broadcast %c0_i32 : i32 to vector<8x8xi32>
    %22 = arith.cmpi sgt, %8, %21 : vector<8x8xi32>
    %23 = arith.cmpi ne, %7, %8 : vector<8x8xi32>
    %24 = arith.andi %22, %23 : vector<8x8xi1>
    %25 = arith.extui %24 : vector<8x8xi1> to vector<8x8xi32>
    %26 = arith.sitofp %25 : vector<8x8xi32> to vector<8x8xf32>
    %27 = arith.mulf %0, %0 : vector<16x32xf32>
    %cst_11 = arith.constant dense<0.000000e+00> : vector<16xf32>
    %28 = vector.multi_reduction <add>, %27, %cst_11 [1] : vector<16x32xf32> to vector<16xf32>
    %29 = vector.shape_cast %28 : vector<16xf32> to vector<16x1xf32>
    %cst_12 = arith.constant 3.200000e+01 : f32
    %30 = vector.broadcast %cst_12 : f32 to vector<16x1xf32>
    %31 = arith.divf %29, %30 : vector<16x1xf32>
    %cst_13 = arith.constant 9.99999974E-6 : f32
    %32 = vector.broadcast %cst_13 : f32 to vector<16x1xf32>
    %33 = arith.addf %31, %32 : vector<16x1xf32>
    %34 = math.rsqrt %33 : vector<16x1xf32>
    %35 = vector.broadcast %34 : vector<16x1xf32> to vector<16x32xf32>
    %36 = arith.mulf %0, %35 : vector<16x32xf32>
    %37 = vector.broadcast %1 : vector<1x32xf32> to vector<16x32xf32>
    %38 = arith.mulf %36, %37 : vector<16x32xf32>
    %39 = arith.truncf %38 : vector<16x32xf32> to vector<16x32xbf16>
    %c0_14 = arith.constant 0 : index
    %c0_15 = arith.constant 0 : index
    %40 = vector.load %arg1[%c0_14, %c0_15] : memref<32x112xbf16, #tpu.memory_space<vmem>>, vector<32x112xbf16>
    %cst_16 = arith.constant dense<0.000000e+00> : vector<16x112xf32>
    %41 = tpu.matmul %39, %40, %cst_16 {dimension_numbers = #tpu.dot_dimension_numbers<[1], [0], [0], [1], [0, 0, 1, 1], [], []>} : vector<16x32xbf16>, vector<32x112xbf16>, vector<16x112xf32> -> vector<16x112xf32>
    %42 = vector.extract_strided_slice %41 {offsets = [0, 0], sizes = [16, 32], strides = [1, 1]} : vector<16x112xf32> to vector<16x32xf32>
    %43 = vector.extract_strided_slice %41 {offsets = [0, 32], sizes = [16, 32], strides = [1, 1]} : vector<16x112xf32> to vector<16x32xf32>
    %44 = vector.extract_strided_slice %41 {offsets = [0, 64], sizes = [16, 16], strides = [1, 1]} : vector<16x112xf32> to vector<16x16xf32>
    %45 = vector.extract_strided_slice %41 {offsets = [0, 80], sizes = [16, 16], strides = [1, 1]} : vector<16x112xf32> to vector<16x16xf32>
    %46 = vector.extract_strided_slice %41 {offsets = [0, 96], sizes = [16, 16], strides = [1, 1]} : vector<16x112xf32> to vector<16x16xf32>
    %47 = arith.mulf %42, %4 : vector<16x32xf32>
    %48 = arith.mulf %43, %6 : vector<16x32xf32>
    %49 = arith.addf %47, %48 : vector<16x32xf32>
    %50 = vector.extract_strided_slice %4 {offsets = [0, 0], sizes = [16, 16], strides = [1, 1]} : vector<16x32xf32> to vector<16x16xf32>
    %51 = arith.mulf %44, %50 : vector<16x16xf32>
    %52 = vector.extract_strided_slice %6 {offsets = [0, 0], sizes = [16, 16], strides = [1, 1]} : vector<16x32xf32> to vector<16x16xf32>
    %53 = arith.mulf %45, %52 : vector<16x16xf32>
    %54 = arith.addf %51, %53 : vector<16x16xf32>
    %55 = vector.extract_strided_slice %49 {offsets = [0, 0], sizes = [8, 32], strides = [1, 1]} : vector<16x32xf32> to vector<8x32xf32>
    %56 = vector.extract_strided_slice %54 {offsets = [0, 0], sizes = [8, 16], strides = [1, 1]} : vector<16x16xf32> to vector<8x16xf32>
    %57 = vector.extract_strided_slice %55 {offsets = [0, 0], sizes = [8, 8], strides = [1, 1]} : vector<8x32xf32> to vector<8x8xf32>
    %58 = vector.extract_strided_slice %56 {offsets = [0, 0], sizes = [8, 8], strides = [1, 1]} : vector<8x16xf32> to vector<8x8xf32>
    %cst_17 = arith.constant dense<0.000000e+00> : vector<8x8xf32>
    %59 = tpu.matmul %57, %58, %cst_17 {dimension_numbers = #tpu.dot_dimension_numbers<[1], [1], [0], [0], [0, 0, 1, 0], [], []>, precision = #tpu.contract_precision<fp32>} : vector<8x8xf32>, vector<8x8xf32>, vector<8x8xf32> -> vector<8x8xf32>
    %60 = arith.addf %59, %12 : vector<8x8xf32>
    %61 = vector.extract_strided_slice %55 {offsets = [0, 8], sizes = [8, 8], strides = [1, 1]} : vector<8x32xf32> to vector<8x8xf32>
    %62 = vector.extract_strided_slice %56 {offsets = [0, 0], sizes = [8, 8], strides = [1, 1]} : vector<8x16xf32> to vector<8x8xf32>
    %cst_18 = arith.constant dense<0.000000e+00> : vector<8x8xf32>
    %63 = tpu.matmul %61, %62, %cst_18 {dimension_numbers = #tpu.dot_dimension_numbers<[1], [1], [0], [0], [0, 0, 1, 0], [], []>, precision = #tpu.contract_precision<fp32>} : vector<8x8xf32>, vector<8x8xf32>, vector<8x8xf32> -> vector<8x8xf32>
    %64 = arith.addf %63, %12 : vector<8x8xf32>
    %65 = vector.extract_strided_slice %55 {offsets = [0, 16], sizes = [8, 8], strides = [1, 1]} : vector<8x32xf32> to vector<8x8xf32>
    %66 = vector.extract_strided_slice %56 {offsets = [0, 8], sizes = [8, 8], strides = [1, 1]} : vector<8x16xf32> to vector<8x8xf32>
    %cst_19 = arith.constant dense<0.000000e+00> : vector<8x8xf32>
    %67 = tpu.matmul %65, %66, %cst_19 {dimension_numbers = #tpu.dot_dimension_numbers<[1], [1], [0], [0], [0, 0, 1, 0], [], []>, precision = #tpu.contract_precision<fp32>} : vector<8x8xf32>, vector<8x8xf32>, vector<8x8xf32> -> vector<8x8xf32>
    %68 = arith.addf %67, %12 : vector<8x8xf32>
    %69 = vector.extract_strided_slice %55 {offsets = [0, 24], sizes = [8, 8], strides = [1, 1]} : vector<8x32xf32> to vector<8x8xf32>
    %70 = vector.extract_strided_slice %56 {offsets = [0, 8], sizes = [8, 8], strides = [1, 1]} : vector<8x16xf32> to vector<8x8xf32>
    %cst_20 = arith.constant dense<0.000000e+00> : vector<8x8xf32>
    %71 = tpu.matmul %69, %70, %cst_20 {dimension_numbers = #tpu.dot_dimension_numbers<[1], [1], [0], [0], [0, 0, 1, 0], [], []>, precision = #tpu.contract_precision<fp32>} : vector<8x8xf32>, vector<8x8xf32>, vector<8x8xf32> -> vector<8x8xf32>
    %72 = arith.addf %71, %12 : vector<8x8xf32>
    %cst_21 = arith.constant 0.000000e+00 : f32
    %73 = vector.broadcast %cst_21 : f32 to vector<8x8xf32>
    %74 = arith.maximumf %60, %73 : vector<8x8xf32>
    %75 = arith.mulf %74, %26 : vector<8x8xf32>
    %cst_22 = arith.constant dense<0.000000e+00> : vector<8x8xf32>
    %76 = tpu.matmul %17, %75, %cst_22 {dimension_numbers = #tpu.dot_dimension_numbers<[1], [0], [0], [1], [0, 0, 1, 1], [], []>, precision = #tpu.contract_precision<fp32>} : vector<8x8xf32>, vector<8x8xf32>, vector<8x8xf32> -> vector<8x8xf32>
    %cst_23 = arith.constant dense<0.000000e+00> : vector<8x8xf32>
    %77 = tpu.matmul %76, %20, %cst_23 {dimension_numbers = #tpu.dot_dimension_numbers<[1], [0], [0], [1], [0, 0, 1, 1], [], []>, precision = #tpu.contract_precision<fp32>} : vector<8x8xf32>, vector<8x8xf32>, vector<8x8xf32> -> vector<8x8xf32>
    %78 = arith.subf %60, %77 : vector<8x8xf32>
    %79 = arith.subf %64, %77 : vector<8x8xf32>
    %80 = arith.subf %68, %77 : vector<8x8xf32>
    %81 = arith.subf %72, %77 : vector<8x8xf32>
    %82 = vector.extract_strided_slice %49 {offsets = [8, 0], sizes = [8, 32], strides = [1, 1]} : vector<16x32xf32> to vector<8x32xf32>
    %83 = vector.extract_strided_slice %54 {offsets = [8, 0], sizes = [8, 16], strides = [1, 1]} : vector<16x16xf32> to vector<8x16xf32>
    %84 = vector.extract_strided_slice %82 {offsets = [0, 0], sizes = [8, 8], strides = [1, 1]} : vector<8x32xf32> to vector<8x8xf32>
    %85 = vector.extract_strided_slice %83 {offsets = [0, 0], sizes = [8, 8], strides = [1, 1]} : vector<8x16xf32> to vector<8x8xf32>
    %cst_24 = arith.constant dense<0.000000e+00> : vector<8x8xf32>
    %86 = tpu.matmul %84, %85, %cst_24 {dimension_numbers = #tpu.dot_dimension_numbers<[1], [1], [0], [0], [0, 0, 1, 0], [], []>, precision = #tpu.contract_precision<fp32>} : vector<8x8xf32>, vector<8x8xf32>, vector<8x8xf32> -> vector<8x8xf32>
    %87 = arith.addf %86, %12 : vector<8x8xf32>
    %88 = vector.extract_strided_slice %82 {offsets = [0, 8], sizes = [8, 8], strides = [1, 1]} : vector<8x32xf32> to vector<8x8xf32>
    %89 = vector.extract_strided_slice %83 {offsets = [0, 0], sizes = [8, 8], strides = [1, 1]} : vector<8x16xf32> to vector<8x8xf32>
    %cst_25 = arith.constant dense<0.000000e+00> : vector<8x8xf32>
    %90 = tpu.matmul %88, %89, %cst_25 {dimension_numbers = #tpu.dot_dimension_numbers<[1], [1], [0], [0], [0, 0, 1, 0], [], []>, precision = #tpu.contract_precision<fp32>} : vector<8x8xf32>, vector<8x8xf32>, vector<8x8xf32> -> vector<8x8xf32>
    %91 = arith.addf %90, %12 : vector<8x8xf32>
    %92 = vector.extract_strided_slice %82 {offsets = [0, 16], sizes = [8, 8], strides = [1, 1]} : vector<8x32xf32> to vector<8x8xf32>
    %93 = vector.extract_strided_slice %83 {offsets = [0, 8], sizes = [8, 8], strides = [1, 1]} : vector<8x16xf32> to vector<8x8xf32>
    %cst_26 = arith.constant dense<0.000000e+00> : vector<8x8xf32>
    %94 = tpu.matmul %92, %93, %cst_26 {dimension_numbers = #tpu.dot_dimension_numbers<[1], [1], [0], [0], [0, 0, 1, 0], [], []>, precision = #tpu.contract_precision<fp32>} : vector<8x8xf32>, vector<8x8xf32>, vector<8x8xf32> -> vector<8x8xf32>
    %95 = arith.addf %94, %12 : vector<8x8xf32>
    %96 = vector.extract_strided_slice %82 {offsets = [0, 24], sizes = [8, 8], strides = [1, 1]} : vector<8x32xf32> to vector<8x8xf32>
    %97 = vector.extract_strided_slice %83 {offsets = [0, 8], sizes = [8, 8], strides = [1, 1]} : vector<8x16xf32> to vector<8x8xf32>
    %cst_27 = arith.constant dense<0.000000e+00> : vector<8x8xf32>
    %98 = tpu.matmul %96, %97, %cst_27 {dimension_numbers = #tpu.dot_dimension_numbers<[1], [1], [0], [0], [0, 0, 1, 0], [], []>, precision = #tpu.contract_precision<fp32>} : vector<8x8xf32>, vector<8x8xf32>, vector<8x8xf32> -> vector<8x8xf32>
    %99 = arith.addf %98, %12 : vector<8x8xf32>
    %cst_28 = arith.constant 0.000000e+00 : f32
    %100 = vector.broadcast %cst_28 : f32 to vector<8x8xf32>
    %101 = arith.maximumf %87, %100 : vector<8x8xf32>
    %102 = arith.mulf %101, %26 : vector<8x8xf32>
    %cst_29 = arith.constant dense<0.000000e+00> : vector<8x8xf32>
    %103 = tpu.matmul %17, %102, %cst_29 {dimension_numbers = #tpu.dot_dimension_numbers<[1], [0], [0], [1], [0, 0, 1, 1], [], []>, precision = #tpu.contract_precision<fp32>} : vector<8x8xf32>, vector<8x8xf32>, vector<8x8xf32> -> vector<8x8xf32>
    %cst_30 = arith.constant dense<0.000000e+00> : vector<8x8xf32>
    %104 = tpu.matmul %103, %20, %cst_30 {dimension_numbers = #tpu.dot_dimension_numbers<[1], [0], [0], [1], [0, 0, 1, 1], [], []>, precision = #tpu.contract_precision<fp32>} : vector<8x8xf32>, vector<8x8xf32>, vector<8x8xf32> -> vector<8x8xf32>
    %105 = arith.subf %87, %104 : vector<8x8xf32>
    %106 = arith.subf %91, %104 : vector<8x8xf32>
    %107 = arith.subf %95, %104 : vector<8x8xf32>
    %108 = arith.subf %99, %104 : vector<8x8xf32>
    %109 = tpu.concatenate %78, %79, %80, %81, %105, %106, %107, %108 in 0 : vector<8x8xf32>, vector<8x8xf32>, vector<8x8xf32>, vector<8x8xf32>, vector<8x8xf32>, vector<8x8xf32>, vector<8x8xf32>, vector<8x8xf32> -> vector<64x8xf32>
    %cst_31 = arith.constant dense<0xFF800000> : vector<64xf32>
    %110 = vector.multi_reduction <maximumf>, %109, %cst_31 [1] : vector<64x8xf32> to vector<64xf32>
    %111 = vector.shape_cast %110 : vector<64xf32> to vector<64x1xf32>
    %112 = vector.broadcast %111 : vector<64x1xf32> to vector<64x8xf32>
    %113 = arith.subf %109, %112 : vector<64x8xf32>
    %114 = math.exp %113 : vector<64x8xf32>
    %cst_32 = arith.constant dense<0.000000e+00> : vector<64xf32>
    %115 = vector.multi_reduction <add>, %114, %cst_32 [1] : vector<64x8xf32> to vector<64xf32>
    %116 = vector.shape_cast %115 : vector<64xf32> to vector<64x1xf32>
    %117 = vector.broadcast %116 : vector<64x1xf32> to vector<64x8xf32>
    %118 = arith.divf %114, %117 : vector<64x8xf32>
    %119 = vector.extract_strided_slice %118 {offsets = [0, 0], sizes = [32, 8], strides = [1, 1]} : vector<64x8xf32> to vector<32x8xf32>
    %120 = vector.extract_strided_slice %46 {offsets = [0, 0], sizes = [8, 16], strides = [1, 1]} : vector<16x16xf32> to vector<8x16xf32>
    %121 = vector.extract_strided_slice %120 {offsets = [0, 0], sizes = [8, 8], strides = [1, 1]} : vector<8x16xf32> to vector<8x8xf32>
    %122 = vector.extract_strided_slice %120 {offsets = [0, 0], sizes = [8, 8], strides = [1, 1]} : vector<8x16xf32> to vector<8x8xf32>
    %123 = vector.extract_strided_slice %120 {offsets = [0, 8], sizes = [8, 8], strides = [1, 1]} : vector<8x16xf32> to vector<8x8xf32>
    %124 = vector.extract_strided_slice %120 {offsets = [0, 8], sizes = [8, 8], strides = [1, 1]} : vector<8x16xf32> to vector<8x8xf32>
    %125 = tpu.concatenate %121, %122, %123, %124 in 1 : vector<8x8xf32>, vector<8x8xf32>, vector<8x8xf32>, vector<8x8xf32> -> vector<8x32xf32>
    %cst_33 = arith.constant dense<0.000000e+00> : vector<32x32xf32>
    %126 = tpu.matmul %119, %125, %cst_33 {dimension_numbers = #tpu.dot_dimension_numbers<[1], [0], [0], [1], [0, 0, 1, 1], [], []>, precision = #tpu.contract_precision<fp32>} : vector<32x8xf32>, vector<8x32xf32>, vector<32x32xf32> -> vector<32x32xf32>
    %127 = vector.extract_strided_slice %126 {offsets = [0, 0], sizes = [8, 8], strides = [1, 1]} : vector<32x32xf32> to vector<8x8xf32>
    %128 = vector.extract_strided_slice %126 {offsets = [8, 8], sizes = [8, 8], strides = [1, 1]} : vector<32x32xf32> to vector<8x8xf32>
    %129 = vector.extract_strided_slice %126 {offsets = [16, 16], sizes = [8, 8], strides = [1, 1]} : vector<32x32xf32> to vector<8x8xf32>
    %130 = vector.extract_strided_slice %126 {offsets = [24, 24], sizes = [8, 8], strides = [1, 1]} : vector<32x32xf32> to vector<8x8xf32>
    %131 = tpu.concatenate %127, %128, %129, %130 in 1 : vector<8x8xf32>, vector<8x8xf32>, vector<8x8xf32>, vector<8x8xf32> -> vector<8x32xf32>
    %132 = vector.extract_strided_slice %118 {offsets = [32, 0], sizes = [32, 8], strides = [1, 1]} : vector<64x8xf32> to vector<32x8xf32>
    %133 = vector.extract_strided_slice %46 {offsets = [8, 0], sizes = [8, 16], strides = [1, 1]} : vector<16x16xf32> to vector<8x16xf32>
    %134 = vector.extract_strided_slice %133 {offsets = [0, 0], sizes = [8, 8], strides = [1, 1]} : vector<8x16xf32> to vector<8x8xf32>
    %135 = vector.extract_strided_slice %133 {offsets = [0, 0], sizes = [8, 8], strides = [1, 1]} : vector<8x16xf32> to vector<8x8xf32>
    %136 = vector.extract_strided_slice %133 {offsets = [0, 8], sizes = [8, 8], strides = [1, 1]} : vector<8x16xf32> to vector<8x8xf32>
    %137 = vector.extract_strided_slice %133 {offsets = [0, 8], sizes = [8, 8], strides = [1, 1]} : vector<8x16xf32> to vector<8x8xf32>
    %138 = tpu.concatenate %134, %135, %136, %137 in 1 : vector<8x8xf32>, vector<8x8xf32>, vector<8x8xf32>, vector<8x8xf32> -> vector<8x32xf32>
    %cst_34 = arith.constant dense<0.000000e+00> : vector<32x32xf32>
    %139 = tpu.matmul %132, %138, %cst_34 {dimension_numbers = #tpu.dot_dimension_numbers<[1], [0], [0], [1], [0, 0, 1, 1], [], []>, precision = #tpu.contract_precision<fp32>} : vector<32x8xf32>, vector<8x32xf32>, vector<32x32xf32> -> vector<32x32xf32>
    %140 = vector.extract_strided_slice %139 {offsets = [0, 0], sizes = [8, 8], strides = [1, 1]} : vector<32x32xf32> to vector<8x8xf32>
    %141 = vector.extract_strided_slice %139 {offsets = [8, 8], sizes = [8, 8], strides = [1, 1]} : vector<32x32xf32> to vector<8x8xf32>
    %142 = vector.extract_strided_slice %139 {offsets = [16, 16], sizes = [8, 8], strides = [1, 1]} : vector<32x32xf32> to vector<8x8xf32>
    %143 = vector.extract_strided_slice %139 {offsets = [24, 24], sizes = [8, 8], strides = [1, 1]} : vector<32x32xf32> to vector<8x8xf32>
    %144 = tpu.concatenate %140, %141, %142, %143 in 1 : vector<8x8xf32>, vector<8x8xf32>, vector<8x8xf32>, vector<8x8xf32> -> vector<8x32xf32>
    %145 = tpu.concatenate %131, %144 in 0 : vector<8x32xf32>, vector<8x32xf32> -> vector<16x32xf32>
    %146 = arith.truncf %145 : vector<16x32xf32> to vector<16x32xbf16>
    %c0_35 = arith.constant 0 : index
    %c0_36 = arith.constant 0 : index
    %147 = vector.load %arg2[%c0_35, %c0_36] : memref<32x32xbf16, #tpu.memory_space<vmem>>, vector<32x32xbf16>
    %cst_37 = arith.constant dense<0.000000e+00> : vector<16x32xf32>
    %148 = tpu.matmul %146, %147, %cst_37 {dimension_numbers = #tpu.dot_dimension_numbers<[1], [0], [0], [1], [0, 0, 1, 1], [], []>} : vector<16x32xbf16>, vector<32x32xbf16>, vector<16x32xf32> -> vector<16x32xf32>
    %149 = arith.addf %0, %148 : vector<16x32xf32>
    %150 = arith.mulf %149, %149 : vector<16x32xf32>
    %cst_38 = arith.constant dense<0.000000e+00> : vector<16xf32>
    %151 = vector.multi_reduction <add>, %150, %cst_38 [1] : vector<16x32xf32> to vector<16xf32>
    %152 = vector.shape_cast %151 : vector<16xf32> to vector<16x1xf32>
    %cst_39 = arith.constant 3.200000e+01 : f32
    %153 = vector.broadcast %cst_39 : f32 to vector<16x1xf32>
    %154 = arith.divf %152, %153 : vector<16x1xf32>
    %cst_40 = arith.constant 9.99999974E-6 : f32
    %155 = vector.broadcast %cst_40 : f32 to vector<16x1xf32>
    %156 = arith.addf %154, %155 : vector<16x1xf32>
    %157 = math.rsqrt %156 : vector<16x1xf32>
    %158 = vector.broadcast %157 : vector<16x1xf32> to vector<16x32xf32>
    %159 = arith.mulf %149, %158 : vector<16x32xf32>
    %160 = vector.broadcast %2 : vector<1x32xf32> to vector<16x32xf32>
    %161 = arith.mulf %159, %160 : vector<16x32xf32>
    %162 = arith.truncf %161 : vector<16x32xf32> to vector<16x32xbf16>
    %c0_41 = arith.constant 0 : index
    %c0_42 = arith.constant 0 : index
    %163 = vector.load %arg3[%c0_41, %c0_42] : memref<32x192xbf16, #tpu.memory_space<vmem>>, vector<32x192xbf16>
    %cst_43 = arith.constant dense<0.000000e+00> : vector<16x192xf32>
    %164 = tpu.matmul %162, %163, %cst_43 {dimension_numbers = #tpu.dot_dimension_numbers<[1], [0], [0], [1], [0, 0, 1, 1], [], []>} : vector<16x32xbf16>, vector<32x192xbf16>, vector<16x192xf32> -> vector<16x192xf32>
    %165 = vector.extract_strided_slice %164 {offsets = [0, 0], sizes = [16, 96], strides = [1, 1]} : vector<16x192xf32> to vector<16x96xf32>
    %166 = vector.extract_strided_slice %164 {offsets = [0, 96], sizes = [16, 96], strides = [1, 1]} : vector<16x192xf32> to vector<16x96xf32>
    %167 = arith.negf %165 : vector<16x96xf32>
    %168 = math.exp %167 : vector<16x96xf32>
    %cst_44 = arith.constant 1.000000e+00 : f32
    %169 = vector.broadcast %cst_44 : f32 to vector<16x96xf32>
    %170 = arith.addf %169, %168 : vector<16x96xf32>
    %171 = arith.divf %169, %170 : vector<16x96xf32>
    %172 = arith.mulf %165, %171 : vector<16x96xf32>
    %173 = arith.mulf %172, %166 : vector<16x96xf32>
    %174 = arith.truncf %173 : vector<16x96xf32> to vector<16x96xbf16>
    %c0_45 = arith.constant 0 : index
    %c0_46 = arith.constant 0 : index
    %175 = vector.load %arg4[%c0_45, %c0_46] : memref<96x32xbf16, #tpu.memory_space<vmem>>, vector<96x32xbf16>
    %cst_47 = arith.constant dense<0.000000e+00> : vector<16x32xf32>
    %176 = tpu.matmul %174, %175, %cst_47 {dimension_numbers = #tpu.dot_dimension_numbers<[1], [0], [0], [1], [0, 0, 1, 1], [], []>} : vector<16x96xbf16>, vector<96x32xbf16>, vector<16x32xf32> -> vector<16x32xf32>
    %177 = arith.addf %149, %176 : vector<16x32xf32>
    %c0_48 = arith.constant 0 : index
    %c0_49 = arith.constant 0 : index
    %178 = vector.load %arg7[%c0_48, %c0_49] : memref<16x32xf32, #tpu.memory_space<vmem>>, vector<16x32xf32>
    tpu.vector_store %arg7[%c0_48, %c0_49], %177 {strides = array<i32>} : memref<16x32xf32, #tpu.memory_space<vmem>>, vector<16x32xf32>,
    return
  }
}

</mosaic_0001>

<bundles_post_ra>
// kernel: tpu_custom_call.1
= control target key start
LH: loop header
LB: loop body
LE: loop exit
PB: predicated region body
PF: predicated region fallthrough
CT: control target
= control target key end

     0   :  { %12 = vsyncpa [#allocation3], 0  ;;  %s8952_s0 = inlined_call_operand.hbm [shape: f32[16,32], index: 0, kind: input, shape index: {}]   ;;  %s8953_s1 = inlined_call_operand.hbm [shape: bf16[32,112], index: 1, kind: input, shape index: {}]   ;;  %s8954_s2 = inlined_call_operand.hbm [shape: bf16[32,32], index: 2, kind: input, shape index: {}]   ;;  %s8955_s3 = inlined_call_operand.vmem [shape: bf16[32,192], index: 3, kind: input, shape index: {}]   ;;  %s8956_s4 = inlined_call_operand.vmem [shape: bf16[96,32], index: 4, kind: input, shape index: {}]   ;;  %s8957_s5 = inlined_call_operand.vmem [shape: f32[2,32], index: 5, kind: input, shape index: {}]   ;;  %s8958_s6 = inlined_call_operand.vmem [shape: f32[2,16,32], index: 6, kind: input, shape index: {}]   ;;  %s8959_s7 = inlined_call_operand.hbm [shape: f32[16,32], index: 7, kind: output, shape index: {}]  }
   0x1   :  { %13 = vsyncpa [#allocation6], 0 }
   0x2   :  { %14 = vsyncpa [#allocation4], 0  ;;  %s8170_s24 = smov [#allocation5]  }
   0x3   :  { %s32_s25 = sshll.u32 %s8170_s24, 4  ;;  %s33_s25 = int_to_ptr.vmem [resolvable:$true] %s32_s25 }
   0x4   :  { %s8092_s26 = scalar_lea.vmem %s33_s25, 256  ;;  %p8097_p1 = scmp.lt.s32.totalorder %s33_s25, %s33_s25 }
   0x5   :  { %p8093_p0 = scmp.ne.s32.totalorder %s33_s25, %s8092_s26  ;;  %p8098_p2 = scmp.lt.s32.totalorder %s8092_s26, %s8092_s26 }
   0x7   :  { %p8099_p3 = por %p8098_p2, %p8097_p1 }
   0x9   :  { %p8100_p4 = pnand %p8099_p3, %p8093_p0 }
   0xb   :  { %8103 = shalt.err (!%p8100_p4)
}
   0xc   :  { %s8171_s27 = smov 64   ;;  %s8172_s28 = smov 4  }
   0xd   :  { %38 = dma.hbm_to_vmem [thread:$0]  %s8953_s1, 256, %s33_s25, [#allocation6], %s8171_s27, %s8171_s27, %s8172_s28  }
   0xe   :  { %s8173_s8 = smov [#allocation2]  }
   0xf   :  { %s20_s9 = sshll.u32 %s8173_s8, 4  ;;  %s21_s9 = int_to_ptr.vmem [resolvable:$true] %s20_s9 }
  0x10   :  { %s8112_s10 = scalar_lea.vmem %s21_s9, 256  ;;  %p8117_p6 = scmp.lt.s32.totalorder %s21_s9, %s21_s9 }
  0x11   :  { %p8113_p5 = scmp.ne.s32.totalorder %s21_s9, %s8112_s10  ;;  %p8118_p7 = scmp.lt.s32.totalorder %s8112_s10, %s8112_s10 }
  0x13   :  { %p8119_p8 = por %p8118_p7, %p8117_p6 }
  0x15   :  { %p8120_p9 = pnand %p8119_p8, %p8113_p5 }
  0x17   :  { %8123 = shalt.err (!%p8120_p9)
}
  0x18   :  { %s8174_s11 = smov 128   ;;  %s8175_s12 = smov 8  }
  0x19   :  { %26 = dma.hbm_to_vmem [thread:$0]  %s8952_s0, 256, %s21_s9, [#allocation3], %s8174_s11, %s8174_s11, %s8175_s12  }
  0x1a   :  { %s8176_s1 = smov [#allocation7]  }
  0x1b   :  { %s44_s15 = sshll.u32 %s8176_s1, 4  ;;  %s45_s15 = int_to_ptr.vmem [resolvable:$true] %s44_s15 }
  0x1c   :  { %s8132_s16 = scalar_lea.vmem %s45_s15, 256  ;;  %p8137_p11 = scmp.lt.s32.totalorder %s45_s15, %s45_s15 }
  0x1d   :  { %p8133_p10 = scmp.ne.s32.totalorder %s45_s15, %s8132_s16  ;;  %p8138_p12 = scmp.lt.s32.totalorder %s8132_s16, %s8132_s16 }
  0x1f   :  { %p8139_p13 = por %p8138_p12, %p8137_p11 }
  0x21   :  { %p8140_p0 = pnand %p8139_p13, %p8133_p10 }
  0x23   :  { %8143 = shalt.err (!%p8140_p0)
}
  0x24   :  { %50 = dma.hbm_to_vmem [thread:$0]  %s8954_s2, 256, %s45_s15, [#allocation6], %s8171_s27, %s8171_s27, %s8172_s28  }
  0x25   :  { %8164 = dma.done.wait [#allocation3], 256  }
  0x26   :  { %8165 = vsyncadd [#allocation3], 4294967040 }
  0x27   :  { %8166 = dma.done.wait [#allocation6], 512  }
  0x28   :  { %8167 = vsyncadd [#allocation6], 4294966784  ;;  %v69_v0 = vld [vmem:[#allocation2] sm:$0xff]  ;;  %vm98_vm0 = vcmask 261120   ;;  %v70_v1 = vld [vmem:[#allocation2 + $0x8] sm:$0xff]  ;;  %v8177_v7 = vmov 0.0  }
  0x29   :  { %v96_v2 = vmul.f32 %v69_v0, %v69_v0  ;;  %v97_v3 = vmul.f32 %v70_v1, %v70_v1  ;;  %v8018_v6 = vld [vmem:[#allocation5 + $0x8] sm:$0xff]   ;;  %7509 = vmatprep.subr.bf16.mxu0 %v8177_v7  ;;  %vm8178_vm1 = vmmov 0   ;;  %v8019_v8 = vld [vmem:[#allocation5] sm:$0xff]   ;;  %7517 = vmatprep.subr.mxu1 %v8177_v7  ;;  %v73_v10 = vld [vmem:[%s8958_s6] sm:$0xff]  ;;  %s8179_s21 = smov 80   ;;  %s8180_s22 = smov 32  }
  0x2a   :  { %7513 = vmatprep.mubr.msk.bf16.mxu0 %vm8178_vm1, %v8177_v7  ;;  %7510 = vmatpush3.bf16.msra.mxu0 %v8018_v6  ;;  %v7253_v9 = vld [vmem:[%s8958_s6 + $0x10] sm:$0xff]  ;;  %v7258_v20 = vld [vmem:[%s8957_s5] ss:$0 sm:$0xff]  ;;  %s8181_s25 = smov 112   ;;  %s8182_s26 = smov 96   ;;  %v8288_v40 = vld [vmem:[%s8958_s6 + $0x8] sm:$0xff] }
  0x2b   :  { %v99_v4 = vsel %vm98_vm0, %v96_v2, 0.0  ;;  %v102_v5 = vsel %vm98_vm0, %v97_v3, 0.0  ;;  %7511 = vmatprep.subr.bf16.mxu0 %v8177_v7  ;;  %7519 = vmatprep.mubr.msk.f32.mxu1 %vm8178_vm1, %v8177_v7  ;;  %s8183_s28 = smov 104   ;;  %s8184_s29 = smov 120   ;;  %v7254_v41 = vld [vmem:[%s8958_s6 + $0x18] sm:$0xff]  ;;  %vm234_vm2 = vcmask 64512  }
  0x2c   :  { %100 = vadd.xlane.f32.xlu0 %v99_v4  ;;  %213 = vrot.lane.b32.xlu1 %v7253_v9, %s8179_s21  ;;  %s8185_s9 = smov 56   ;;  %s8187_s6 = smov 40   ;;  %vm5752_vm9 = vcmask 130048   ;;  %vm5754_vm10 = vcmask 195584   ;;  %vm7186_vm11 = vcmask 785408  }
  0x2e   :  { %7512 = vmatpush3.bf16.msra.mxu0 %v8019_v8 }
  0x2f   :  { %7532 = vmatprep.subr.mxu0 %v8177_v7 }
  0x30   :  { %103 = vadd.xlane.f32.xlu0 %v102_v5  ;;  %185 = vrot.lane.b32.xlu1 %v7253_v9, %s8180_s22 }
  0x46   :  { %205 = vrot.lane.b32.xlu0 %v73_v10, %s8171_s27 }
  0x9e   :  { %v214_v25 = vpop.permute.xlu1 %213 }
  0xa2   :  { %v186_v28 = vpop.permute.xlu1 %185 }
  0xb5   :  { %v101_v11 = vpop.xlane.xlu0 %100 }
  0xb6   :  { %v106_v12 = vmul.f32 0.03125, %v101_v11 }
  0xb8   :  { %v108_v13 = vadd.f32 1e-05, %v106_v12 }
  0xb9   :  { %v104_v14 = vpop.xlane.xlu0 %103 }
  0xba   :  { %8034 = vrsqrt.f32 %v108_v13  ;;  %v107_v15 = vmul.f32 0.03125, %v104_v14 }
  0xbc   :  { %v109_v16 = vadd.f32 1e-05, %v107_v15 }
  0xbd   :  { %v206_v33 = vpop.permute.xlu0 %205 }
  0xbe   :  { %8036 = vrsqrt.f32 %v109_v16 }
  0xc7   :  { %v8035_v17 = vpop.eup %8034 }
  0xc8   :  { %v112_v18 = vmul.f32 %v8035_v17, %v69_v0 }
  0xca   :  { %v118_v22 = vmul.f32 %v7258_v20, %v112_v18 }
  0xcb   :  { %v8037_v19 = vpop.eup %8036 }
  0xcc   :  { %v113_v21 = vmul.f32 %v8037_v19, %v70_v1 }
  0xce   :  { %v119_v23 = vmul.f32 %v7258_v20, %v113_v21 }
  0xd0   :  { %v120_v24 = vpack.c.bf16 %v119_v23, %v118_v22 }
  0xd2   :  { %7514 = vmatmul.mubr.msk.bf16.vlgmr.msra.gmra.mxu0 %vm98_vm0, %v120_v24 }
  0xd3   :  { %7534 = vmatprep.mubr.msk.f32.mxu0 %vm8178_vm1, %v8177_v7 }
 0x192   :  { %v8272_v26 = vpop.f32.mrf.mxu0 }
 0x193   :  { %v219_v27 = vmul.f32 %v214_v25, %v8272_v26  ;;  %v191_v31 = vmul.f32 %v186_v28, %v8272_v26  ;;  %v211_v34 = vmul.f32 %v206_v33, %v8272_v26  ;;  %v181_v37 = vmul.f32 %v8272_v26, %v73_v10 }
 0x194   :  { %v7515_v29 = vpop.f32.mrf.mxu0  ;;  %v78_v33 = vlaneseq }
 0x195   :  { %223 = vrot.lane.b32.xlu1 %v219_v27, %s8181_s25 }
 0x196   :  { %v8276_v30 = vpop.f32.mrf.mxu0 }
 0x197   :  { %v182_v29 = vmul.f32 %v8276_v30, %v8288_v40 }
 0x198   :  { %v7516_v32 = vpop.f32.mrf.mxu0 }
 0x199   :  { %195 = vrot.lane.b32.xlu1 %v191_v31, %s8182_s26 }
 0x207   :  { %v224_v35 = vpop.permute.xlu1 %223 }
 0x208   :  { %v229_v36 = vadd.f32 %v224_v35, %v211_v34  ;;  %v8437_v34 = vand.u32 127, %v78_v33  ;;  %v8439_v35 = vshrl.u32 %v78_v33, 7 }
 0x20a   :  { %232 = vrot.lane.b32.xlu1 %v229_v36, %s8171_s27  ;;  %vm82_vm3 = vcmp.gt.s32.totalorder %v8437_v34, %v8439_v35  ;;  %vm91_vm5 = vcmp.gt.s32.totalorder %v8437_v34, 0  ;;  %vm92_vm6 = vcmp.ne.s32.totalorder %v8439_v35, %v8437_v34  ;;  %vm8511_vm8 = vcmp.le.s32.totalorder %v8439_v35, %v8437_v34 }
 0x20b   :  { %v196_v38 = vpop.permute.xlu1 %195  ;;  %vm93_vm7 = vmand %vm91_vm5, %vm92_vm6 }
 0x20c   :  { %v201_v39 = vadd.f32 %v196_v38, %v181_v37 }
 0x20e   :  { %1590 = vrot.lane.b32.xlu0 %v201_v39, %s8183_s28  ;;  %686 = vrot.lane.b32.xlu1 %v201_v39, %s8184_s29  ;;  %v236_v42 = vsel %vm234_vm2, %v201_v39, 0 }
 0x20f   :  { %v306_v43 = vand.u32 4294901760, %v236_v42 }
 0x211   :  { %v307_v44 = vsub.f32 %v236_v42, %v306_v43  ;;  %v8446_v42 = vsel %vm82_vm3, -1e+30, %v8177_v7 }
 0x212   :  { %207 = vrot.lane.b32.xlu0 %v8288_v40, %s8171_s27  ;;  %1138 = vrot.lane.b32.xlu1 %v229_v36, %s8185_s9  ;;  %v84_v36 = vadd.s32 1, %v8437_v34  ;;  %v8186_v34 = vmov 1.0  }
 0x213   :  { %v308_v45 = vand.u32 4294901760, %v307_v44 }
 0x214   :  { %vm85_vm4 = vcmp.eq.s32.totalorder %v8439_v35, %v84_v36 }
 0x215   :  { %v309_v48 = vsub.f32 %v307_v44, %v308_v45 }
 0x216   :  { %1136 = vrot.lane.b32.xlu1 %v201_v39, %s8181_s25 }
 0x217   :  { %v310_v52 = vand.u32 4294901760, %v309_v48 }
 0x21a   :  { %215 = vrot.lane.b32.xlu1 %v7254_v41, %s8179_s21 }
 0x21e   :  { %187 = vrot.lane.b32.xlu1 %v7254_v41, %s8180_s22 }
 0x27c   :  { %v233_v46 = vpop.permute.xlu1 %232 }
 0x27d   :  { %v238_v47 = vsel %vm234_vm2, %v233_v46, 0 }
 0x27e   :  { %v271_v49 = vand.u32 4294901760, %v238_v47 }
 0x280   :  { %v8301_v50 = vsub.f32 %v238_v47, %v271_v49  ;;  %7518 = vmatpush3.xpose.msra.mxu1 %v271_v49  ;;  %7533 = vmatpush3.xpose.msra.mxu0 %v271_v49  ;;  %v687_v51 = vpop.permute.xlu1 %686  ;;  %v1591_v14 = vpop.permute.xlu0 %1590 }
 0x281   :  { %7542 = vmatprep.subr.mxu0 %v8177_v7  ;;  %7522 = vmatprep.subr.mxu1 %v8177_v7  ;;  %v688_v54 = vsel %vm234_vm2, %v687_v51, 0  ;;  %v1592_v16 = vsel %vm234_vm2, %v1591_v14, 0 }
 0x282   :  { %v8306_v53 = vand.u32 4294901760, %v8301_v50  ;;  %v8313_v57 = vand.u32 4294901760, %v688_v54  ;;  %v1660_v17 = vand.u32 4294901760, %v1592_v16 }
 0x283   :  { %7520 = vmatmul.mubr.f32.vlgmr.msra.gmra.mxu1 %v310_v52  ;;  %7535 = vmatmul.mubr.f32.vlgmr.msra.gmra.mxu0 %v308_v45 }
 0x284   :  { %7543 = vmatpush3.xpose.msra.mxu0 %v271_v49  ;;  %v1139_v55 = vpop.permute.xlu1 %1138  ;;  %7544 = vmatprep.mubr.msk.f32.mxu0 %vm8178_vm1, %v8177_v7  ;;  %v350_v56 = vsub.f32 %v8301_v50, %v8306_v53  ;;  %v757_v63 = vsub.f32 %v688_v54, %v8313_v57  ;;  %v1661_v19 = vsub.f32 %v1592_v16, %v1660_v17  ;;  %v208_v24 = vpop.permute.xlu0 %207 }
 0x285   :  { %v1142_v58 = vsel %vm234_vm2, %v1139_v55, 0  ;;  %7552 = vmatprep.subr.mxu0 %v8177_v7  ;;  %7524 = vmatprep.mubr.msk.f32.mxu1 %vm8178_vm1, %v8177_v7  ;;  %v212_v25 = vmul.f32 %v208_v24, %v8276_v30 }
 0x286   :  { %v8319_v59 = vand.u32 4294901760, %v1142_v58  ;;  %v351_v60 = vand.u32 4294901760, %v350_v56  ;;  %v758_v2 = vand.u32 4294901760, %v757_v63  ;;  %v1662_v21 = vand.u32 4294901760, %v1661_v19 }
 0x287   :  { %7545 = vmatmul.mubr.f32.vlgmr.msra.gmra.mxu0 %v306_v43 }
 0x288   :  { %v8322_v61 = vsub.f32 %v1142_v58, %v8319_v59  ;;  %7523 = vmatpush3.xpose.msra.mxu1 %v351_v60  ;;  %7553 = vmatpush3.xpose.msra.mxu0 %v351_v60  ;;  %v1137_v62 = vpop.permute.xlu1 %1136  ;;  %v759_v9 = vsub.f32 %v757_v63, %v758_v2  ;;  %v1663_v22 = vsub.f32 %v1661_v19, %v1662_v21 }
 0x289   :  { %7554 = vmatprep.mubr.msk.f32.mxu0 %vm8178_vm1, %v8177_v7  ;;  %7527 = vmatprep.subr.mxu1 %v8177_v7  ;;  %v1140_v4 = vsel %vm234_vm2, %v1137_v62, 0 }
 0x28a   :  { %7562 = vmatprep.subr.mxu0 %v8177_v7  ;;  %v8330_v0 = vand.u32 4294901760, %v8322_v61  ;;  %v8349_v10 = vand.u32 4294901760, %v1140_v4  ;;  %v760_v12 = vand.u32 4294901760, %v759_v9  ;;  %v1664_v23 = vand.u32 4294901760, %v1663_v22 }
 0x28b   :  { %7525 = vmatmul.mubr.f32.vlgmr.msra.gmra.mxu1 %v306_v43  ;;  %7555 = vmatmul.mubr.f32.vlgmr.msra.gmra.mxu0 %v8313_v57 }
 0x28c   :  { %7528 = vmatpush3.xpose.msra.mxu1 %v8301_v50  ;;  %7563 = vmatpush3.xpose.msra.mxu0 %v271_v49  ;;  %v216_v1 = vpop.permute.xlu1 %215  ;;  %v1254_v5 = vsub.f32 %v8322_v61, %v8330_v0  ;;  %v1211_v13 = vsub.f32 %v1140_v4, %v8349_v10 }
 0x28d   :  { %v220_v3 = vmul.f32 %v216_v1, %v8276_v30  ;;  %7529 = vmatprep.mubr.msk.f32.mxu1 %vm8178_vm1, %v8177_v7  ;;  %7564 = vmatprep.mubr.msk.f32.mxu0 %vm8178_vm1, %v8177_v7 }
 0x28e   :  { %7537 = vmatprep.subr.mxu1 %v8177_v7  ;;  %7572 = vmatprep.subr.mxu0 %v8177_v7  ;;  %v1255_v11 = vand.u32 4294901760, %v1254_v5  ;;  %v1212_v15 = vand.u32 4294901760, %v1211_v13 }
 0x28f   :  { %7530 = vmatmul.mubr.f32.vlgmr.msra.gmra.mxu1 %v307_v44  ;;  %7565 = vmatmul.mubr.f32.vlgmr.msra.gmra.mxu0 %v758_v2  ;;  %v8449_v44 = vsel %vm85_vm4, 1.0, %v8177_v7  ;;  %v8465_v2 = vsel %vm93_vm7, 1.0, %v8177_v7 }
 0x290   :  { %225 = vrot.lane.b32.xlu0 %v220_v3, %s8181_s25  ;;  %7538 = vmatpush3.xpose.msra.mxu1 %v8306_v53  ;;  %v188_v6 = vpop.permute.xlu1 %187  ;;  %v1213_v18 = vsub.f32 %v1211_v13, %v1212_v15  ;;  %v2043_v48 = vsel %vm234_vm2, %v8449_v44, 0 }
 0x291   :  { %7573 = vmatpush3.xpose.msra.mxu0 %v271_v49  ;;  %v192_v8 = vmul.f32 %v188_v6, %v8276_v30  ;;  %7539 = vmatprep.mubr.msk.f32.mxu1 %vm8178_vm1, %v8177_v7  ;;  %v8454_v54 = vsub.f32 %v2043_v48, %v2043_v48 }
 0x292   :  { %7574 = vmatprep.mubr.msk.f32.mxu0 %vm8178_vm1, %v8177_v7  ;;  %7547 = vmatprep.subr.mxu1 %v8177_v7  ;;  %v1214_v20 = vand.u32 4294901760, %v1213_v18 }
 0x293   :  { %7540 = vmatmul.mubr.f32.vlgmr.msra.gmra.mxu1 %v306_v43  ;;  %7582 = vmatprep.subr.mxu0 %v8177_v7  ;;  %v8460_v60 = vand.u32 4294901760, %v8454_v54 }
 0x294   :  { %7575 = vmatmul.mubr.f32.vlgmr.msra.gmra.mxu0 %v8313_v57  ;;  %197 = vrot.lane.b32.xlu1 %v192_v8, %s8182_s26 }
 0x295   :  { %7548 = vmatpush3.xpose.msra.mxu1 %v271_v49  ;;  %7583 = vmatpush3.xpose.msra.mxu0 %v1255_v11  ;;  %v2114_v3 = vsub.f32 %v8454_v54, %v8460_v60 }
 0x296   :  { %7549 = vmatprep.mubr.msk.f32.mxu1 %vm8178_vm1, %v8177_v7  ;;  %7584 = vmatprep.mubr.msk.f32.mxu0 %vm8178_vm1, %v8177_v7 }
 0x297   :  { %7557 = vmatprep.subr.mxu1 %v8177_v7  ;;  %7592 = vmatprep.subr.mxu0 %v8177_v7 }
 0x298   :  { %7550 = vmatmul.mubr.f32.vlgmr.msra.gmra.mxu1 %v760_v12  ;;  %7585 = vmatmul.mubr.f32.vlgmr.msra.gmra.mxu0 %v8349_v10 }
 0x299   :  { %7558 = vmatpush3.xpose.msra.mxu1 %v8301_v50  ;;  %7593 = vmatpush3.xpose.msra.mxu0 %v8319_v59 }
 0x29a   :  { %7559 = vmatprep.mubr.msk.f32.mxu1 %vm8178_vm1, %v8177_v7  ;;  %7594 = vmatprep.mubr.msk.f32.mxu0 %vm8178_vm1, %v8177_v7 }
 0x29b   :  { %7567 = vmatprep.subr.mxu1 %v8177_v7  ;;  %7602 = vmatprep.subr.mxu0 %v8177_v7 }
 0x29c   :  { %7560 = vmatmul.mubr.f32.vlgmr.msra.gmra.mxu1 %v757_v63  ;;  %7595 = vmatmul.mubr.f32.vlgmr.msra.gmra.mxu0 %v1212_v15 }
 0x29d   :  { %7568 = vmatpush3.xpose.msra.mxu1 %v8306_v53  ;;  %7603 = vmatpush3.xpose.msra.mxu0 %v8319_v59 }
 0x29e   :  { %7569 = vmatprep.mubr.msk.f32.mxu1 %vm8178_vm1, %v8177_v7  ;;  %7604 = vmatprep.mubr.msk.f32.mxu0 %vm8178_vm1, %v8177_v7 }
 0x29f   :  { %7577 = vmatprep.subr.mxu1 %v8177_v7  ;;  %7612 = vmatprep.subr.mxu0 %v8177_v7 }
 0x2a0   :  { %7570 = vmatmul.mubr.f32.vlgmr.msra.gmra.mxu1 %v8313_v57  ;;  %7605 = vmatmul.mubr.f32.vlgmr.msra.gmra.mxu0 %v8349_v10 }
 0x2a1   :  { %7578 = vmatpush3.xpose.msra.mxu1 %v8319_v59  ;;  %7613 = vmatpush3.xpose.msra.mxu0 %v1255_v11 }
 0x2a2   :  { %7579 = vmatprep.mubr.msk.f32.mxu1 %vm8178_vm1, %v8177_v7  ;;  %7614 = vmatprep.mubr.msk.f32.mxu0 %vm8178_vm1, %v8177_v7 }
 0x2a3   :  { %7587 = vmatprep.subr.mxu1 %v8177_v7  ;;  %7622 = vmatprep.subr.mxu0 %v8177_v7 }
 0x2a4   :  { %7580 = vmatmul.mubr.f32.vlgmr.msra.gmra.mxu1 %v1214_v20  ;;  %7615 = vmatmul.mubr.f32.vlgmr.msra.gmra.mxu0 %v1660_v17 }
 0x2a5   :  { %7588 = vmatpush3.xpose.msra.mxu1 %v8322_v61  ;;  %7623 = vmatpush3.xpose.msra.mxu0 %v8319_v59 }
 0x2a6   :  { %7589 = vmatprep.mubr.msk.f32.mxu1 %vm8178_vm1, %v8177_v7  ;;  %7624 = vmatprep.mubr.msk.f32.mxu0 %vm8178_vm1, %v8177_v7 }
 0x2a7   :  { %7597 = vmatprep.subr.mxu1 %v8177_v7  ;;  %7632 = vmatprep.subr.mxu0 %v8177_v7 }
 0x2a8   :  { %7590 = vmatmul.mubr.f32.vlgmr.msra.gmra.mxu1 %v1211_v13  ;;  %7625 = vmatmul.mubr.f32.vlgmr.msra.gmra.mxu0 %v1662_v21  ;;  %v8472_v13 = vand.u32 4294901760, %v2114_v3 }
 0x2a9   :  { %7598 = vmatpush3.xpose.msra.mxu1 %v8330_v0  ;;  %7633 = vmatpush3.xpose.msra.mxu0 %v8319_v59 }
 0x2aa   :  { %7599 = vmatprep.mubr.msk.f32.mxu1 %vm8178_vm1, %v8177_v7  ;;  %7634 = vmatprep.mubr.msk.f32.mxu0 %vm8178_vm1, %v8177_v7 }
 0x2ab   :  { %7607 = vmatprep.subr.mxu1 %v8177_v7  ;;  %7642 = vmatprep.subr.mxu0 %v8177_v7 }
 0x2ac   :  { %7600 = vmatmul.mubr.f32.vlgmr.msra.gmra.mxu1 %v8349_v10  ;;  %7635 = vmatmul.mubr.f32.vlgmr.msra.gmra.mxu0 %v1660_v17 }
 0x2ad   :  { %7608 = vmatpush3.xpose.msra.mxu1 %v8319_v59  ;;  %7609 = vmatprep.mubr.msk.f32.mxu1 %vm8178_vm1, %v8177_v7 }
 0x2ae   :  { %7617 = vmatprep.subr.mxu1 %v8177_v7  ;;  %7644 = vmatprep.mubr.msk.f32.mxu0 %vm8178_vm1, %v8177_v7 }
 0x2b0   :  { %7610 = vmatmul.mubr.f32.vlgmr.msra.gmra.mxu1 %v1664_v23 }
 0x2b1   :  { %7618 = vmatpush3.xpose.msra.mxu1 %v8322_v61  ;;  %7619 = vmatprep.mubr.msk.f32.mxu1 %vm8178_vm1, %v8177_v7 }
 0x2b2   :  { %7627 = vmatprep.subr.mxu1 %v8177_v7 }
 0x2b4   :  { %7620 = vmatmul.mubr.f32.vlgmr.msra.gmra.mxu1 %v1661_v19 }
 0x2b5   :  { %7628 = vmatpush3.xpose.msra.mxu1 %v8330_v0  ;;  %7629 = vmatprep.mubr.msk.f32.mxu1 %vm8178_vm1, %v8177_v7 }
 0x2b6   :  { %7637 = vmatprep.subr.mxu1 %v8177_v7 }
 0x2b8   :  { %7630 = vmatmul.mubr.f32.vlgmr.msra.gmra.mxu1 %v1660_v17 }
 0x2b9   :  { %7639 = vmatprep.mubr.msk.f32.mxu1 %vm8178_vm1, %v8177_v7 }
 0x302   :  { %v226_v27 = vpop.permute.xlu0 %225 }
 0x303   :  { %v230_v28 = vadd.f32 %v226_v27, %v212_v25 }
 0x305   :  { %2945 = vrot.lane.b32.xlu0 %v230_v28, %s8171_s27  ;;  %s8188_s27 = smov 48  }
 0x306   :  { %v198_v31 = vpop.permute.xlu1 %197 }
 0x307   :  { %v8428_v32 = vadd.f32 %v198_v31, %v182_v29 }
 0x309   :  { %3398 = vrot.lane.b32.xlu1 %v8428_v32, %s8184_s29  ;;  %3850 = vrot.lane.b32.xlu0 %v230_v28, %s8185_s9 }
 0x30d   :  { %3848 = vrot.lane.b32.xlu1 %v8428_v32, %s8181_s25  ;;  %4302 = vrot.lane.b32.xlu0 %v8428_v32, %s8183_s28 }
 0x343   :  { %v312_v37 = vpop.f32.mrf.mxu1  ;;  %v536_v38 = vpop.f32.mrf.mxu0 }
 0x344   :  { %v313_v47 = vadd.f32 %v312_v37, %v8446_v42 }
 0x345   :  { %v7521_v39 = vpop.f32.mrf.mxu1  ;;  %v7536_v40 = vpop.f32.mrf.mxu0 }
 0x347   :  { %v682_v41 = vpop.f32.mrf.mxu0 }
 0x349   :  { %v7546_v43 = vpop.f32.mrf.mxu0 }
 0x34b   :  { %v388_v45 = vpop.f32.mrf.mxu1  ;;  %v838_v46 = vpop.f32.mrf.mxu0 }
 0x34c   :  { %v389_v51 = vadd.f32 %v388_v45, %v313_v47 }
 0x34d   :  { %v7526_v49 = vpop.f32.mrf.mxu1  ;;  %v7556_v50 = vpop.f32.mrf.mxu0 }
 0x34f   :  { %v462_v52 = vpop.f32.mrf.mxu1  ;;  %v986_v53 = vpop.f32.mrf.mxu0 }
 0x350   :  { %v463_v55 = vadd.f32 %v462_v52, %v389_v51 }
 0x351   :  { %v7531_v56 = vpop.f32.mrf.mxu1  ;;  %v7566_v57 = vpop.f32.mrf.mxu0 }
 0x352   :  { %v537_v58 = vadd.f32 %v536_v38, %v463_v55 }
 0x353   :  { %v610_v59 = vpop.f32.mrf.mxu1 }
 0x354   :  { %v611_v61 = vadd.f32 %v610_v59, %v537_v58  ;;  %v1132_v62 = vpop.f32.mrf.mxu0 }
 0x355   :  { %v7541_v63 = vpop.f32.mrf.mxu1 }
 0x356   :  { %v8462_v0 = vadd.f32 %v682_v41, %v611_v61  ;;  %v7576_v1 = vpop.f32.mrf.mxu0 }
 0x358   :  { %v2040_v4 = vmax.f32 %v8462_v0, 0.0  ;;  %v762_v5 = vpop.f32.mrf.mxu1  ;;  %v1292_v6 = vpop.f32.mrf.mxu0 }
 0x359   :  { %v763_v8 = vadd.f32 %v762_v5, %v8446_v42 }
 0x35a   :  { %v2041_v9 = vmul.f32 %v8465_v2, %v2040_v4  ;;  %v7551_v10 = vpop.f32.mrf.mxu1  ;;  %v7586_v11 = vpop.f32.mrf.mxu0 }
 0x35b   :  { %v839_v12 = vadd.f32 %v838_v46, %v763_v8  ;;  %v7256_v10 = vsel %vm8511_vm8, 1.0, %v8177_v7 }
 0x35c   :  { %v912_v14 = vpop.f32.mrf.mxu1  ;;  %v1440_v15 = vpop.f32.mrf.mxu0  ;;  %v2076_v16 = vand.u32 4294901760, %v2041_v9  ;;  %v8518_v11 = vsub.f32 %v7256_v10, %v7256_v10 }
 0x35d   :  { %v913_v17 = vadd.f32 %v912_v14, %v839_v12 }
 0x35e   :  { %v7561_v18 = vpop.f32.mrf.mxu1  ;;  %v7596_v19 = vpop.f32.mrf.mxu0  ;;  %7638 = vmatpush3.msra.mxu1 %v2076_v16  ;;  %v2153_v20 = vsub.f32 %v2041_v9, %v2076_v16  ;;  %v8521_v12 = vand.u32 4294901760, %v8518_v11 }
 0x35f   :  { %v987_v21 = vadd.f32 %v986_v53, %v913_v17  ;;  %7640 = vmatmul.mubr.f32.vlgmr.msra.gmra.mxu1 %v8472_v13  ;;  %7647 = vmatprep.subr.mxu1 %v8177_v7 }
 0x360   :  { %v1060_v22 = vpop.f32.mrf.mxu1  ;;  %v1586_v23 = vpop.f32.mrf.mxu0  ;;  %7648 = vmatpush3.msra.mxu1 %v2153_v20  ;;  %7649 = vmatprep.mubr.msk.f32.mxu1 %vm8178_vm1, %v8177_v7  ;;  %v2154_v24 = vand.u32 4294901760, %v2153_v20  ;;  %v2604_v14 = vsub.f32 %v8518_v11, %v8521_v12 }
 0x361   :  { %v1061_v25 = vadd.f32 %v1060_v22, %v987_v21  ;;  %7657 = vmatprep.subr.mxu1 %v8177_v7 }
 0x362   :  { %v7571_v27 = vpop.f32.mrf.mxu1  ;;  %v7606_v28 = vpop.f32.mrf.mxu0  ;;  %v2155_v29 = vsub.f32 %v2153_v20, %v2154_v24 }
 0x363   :  { %v8479_v31 = vadd.f32 %v1132_v62, %v1061_v25  ;;  %7650 = vmatmul.mubr.f32.vlgmr.msra.gmra.mxu1 %v8454_v54 }
 0x364   :  { %v1216_v33 = vpop.f32.mrf.mxu1  ;;  %v1742_v36 = vpop.f32.mrf.mxu0  ;;  %7658 = vmatpush3.msra.mxu1 %v2154_v24  ;;  %v2156_v37 = vand.u32 4294901760, %v2155_v29  ;;  %7659 = vmatprep.mubr.msk.f32.mxu1 %vm8178_vm1, %v8177_v7 }
 0x365   :  { %v1217_v38 = vadd.f32 %v1216_v33, %v8446_v42  ;;  %7667 = vmatprep.subr.mxu1 %v8177_v7 }
 0x366   :  { %v7581_v39 = vpop.f32.mrf.mxu1  ;;  %v7616_v40 = vpop.f32.mrf.mxu0  ;;  %7643 = vmatpush3.msra.mxu0 %v2156_v37 }
 0x367   :  { %v1293_v41 = vadd.f32 %v1292_v6, %v1217_v38  ;;  %7645 = vmatmul.mubr.msk.f32.vlgmr.msra.gmra.mxu0 %vm234_vm2, %v8449_v44  ;;  %7652 = vmatprep.subr.mxu0 %v8177_v7 }
 0x368   :  { %v1366_v43 = vpop.f32.mrf.mxu1  ;;  %v1890_v45 = vpop.f32.mrf.mxu0  ;;  %7653 = vmatpush3.msra.mxu0 %v2076_v16  ;;  %7654 = vmatprep.mubr.msk.f32.mxu0 %vm8178_vm1, %v8177_v7 }
 0x369   :  { %v1367_v46 = vadd.f32 %v1366_v43, %v1293_v41  ;;  %7662 = vmatprep.subr.mxu0 %v8177_v7  ;;  %7660 = vmatmul.mubr.msk.f32.vlgmr.msra.gmra.mxu1 %vm234_vm2, %v8449_v44 }
 0x36a   :  { %v7591_v47 = vpop.f32.mrf.mxu1  ;;  %v7626_v48 = vpop.f32.mrf.mxu0  ;;  %7669 = vmatprep.mubr.msk.f32.mxu1 %vm8178_vm1, %v8177_v7  ;;  %7668 = vmatpush3.msk.msra.mxu1 %vm8511_vm8, %v8186_v34 }
 0x36b   :  { %v1441_v49 = vadd.f32 %v1440_v15, %v1367_v46  ;;  %7655 = vmatmul.mubr.f32.vlgmr.msra.gmra.mxu0 %v8460_v60  ;;  %v8525_v15 = vand.u32 4294901760, %v2604_v14  ;;  %7677 = vmatprep.subr.mxu1 %v8177_v7  ;;  %v2948_v47 = vsel %vm234_vm2, %v8428_v32, 0 }
 0x36c   :  { %v1514_v50 = vpop.f32.mrf.mxu1  ;;  %v2036_v51 = vpop.f32.mrf.mxu0  ;;  %7663 = vmatpush3.msra.mxu0 %v2076_v16  ;;  %7664 = vmatprep.mubr.msk.f32.mxu0 %vm8178_vm1, %v8177_v7 }
 0x36d   :  { %v1515_v52 = vadd.f32 %v1514_v50, %v1441_v49  ;;  %7672 = vmatprep.subr.mxu0 %v8177_v7  ;;  %v8551_v50 = vand.u32 4294901760, %v2948_v47 }
 0x36e   :  { %v7601_v53 = vpop.f32.mrf.mxu1  ;;  %v7636_v55 = vpop.f32.mrf.mxu0 }
 0x36f   :  { %v8500_v56 = vadd.f32 %v1586_v23, %v1515_v52  ;;  %7665 = vmatmul.mubr.msk.f32.vlgmr.msra.gmra.mxu0 %vm234_vm2, %v8449_v44  ;;  %v3019_v53 = vsub.f32 %v2948_v47, %v8551_v50 }
 0x370   :  { %v1666_v57 = vpop.f32.mrf.mxu1  ;;  %7674 = vmatprep.mubr.msk.f32.mxu0 %vm8178_vm1, %v8177_v7  ;;  %7673 = vmatpush3.msra.mxu0 %v8525_v15 }
 0x371   :  { %v1667_v58 = vadd.f32 %v1666_v57, %v8446_v42  ;;  %7682 = vmatprep.subr.mxu0 %v8177_v7 }
 0x372   :  { %v7611_v59 = vpop.f32.mrf.mxu1 }
 0x373   :  { %v1743_v61 = vadd.f32 %v1742_v36, %v1667_v58  ;;  %v3020_v59 = vand.u32 4294901760, %v3019_v53 }
 0x374   :  { %v1816_v62 = vpop.f32.mrf.mxu1 }
 0x375   :  { %v1817_v63 = vadd.f32 %v1816_v62, %v1743_v61 }
 0x376   :  { %v7621_v1 = vpop.f32.mrf.mxu1 }
 0x377   :  { %v1891_v3 = vadd.f32 %v1890_v45, %v1817_v63  ;;  %v2946_v19 = vpop.permute.xlu0 %2945  ;;  %v3021_v1 = vsub.f32 %v3019_v53, %v3020_v59 }
 0x378   :  { %v1964_v4 = vpop.f32.mrf.mxu1  ;;  %v2950_v22 = vsel %vm234_vm2, %v2946_v19, 0 }
 0x379   :  { %v1965_v5 = vadd.f32 %v1964_v4, %v1891_v3  ;;  %v8534_v29 = vand.u32 4294901760, %v2950_v22 }
 0x37a   :  { %v7631_v6 = vpop.f32.mrf.mxu1 }
 0x37b   :  { %v8507_v8 = vadd.f32 %v2036_v51, %v1965_v5  ;;  %v8537_v39 = vsub.f32 %v2950_v22, %v8534_v29  ;;  %v3399_v57 = vpop.permute.xlu1 %3398  ;;  %v3851_v58 = vpop.permute.xlu0 %3850  ;;  %v3022_v5 = vand.u32 4294901760, %v3021_v1 }
 0x37c   :  { %v3400_v61 = vsel %vm234_vm2, %v3399_v57, 0  ;;  %v3854_v62 = vsel %vm234_vm2, %v3851_v58, 0 }
 0x37d   :  { %v8541_v46 = vand.u32 4294901760, %v8537_v39  ;;  %v8574_v63 = vand.u32 4294901760, %v3400_v61  ;;  %v8579_v3 = vand.u32 4294901760, %v3854_v62 }
 0x37f   :  { %v3062_v51 = vsub.f32 %v8537_v39, %v8541_v46  ;;  %v3469_v4 = vsub.f32 %v3400_v61, %v8574_v63  ;;  %v8591_v6 = vsub.f32 %v3854_v62, %v8579_v3  ;;  %v3849_v10 = vpop.permute.xlu1 %3848 }
 0x381   :  { %v3063_v55 = vand.u32 4294901760, %v3062_v51  ;;  %v3470_v14 = vand.u32 4294901760, %v3469_v4 }
 0x41f   :  { %v2117_v35 = vpop.f32.mrf.mxu1 }
 0x421   :  { %v7641_v16 = vpop.f32.mrf.mxu1 }
 0x422   :  { %v3852_v16 = vsel %vm234_vm2, %v3849_v10, 0 }
 0x423   :  { %v2267_v17 = vpop.f32.mrf.mxu1 }
 0x425   :  { %v7651_v18 = vpop.f32.mrf.mxu1 }
 0x426   :  { %v8611_v18 = vand.u32 4294901760, %v3852_v16 }
 0x427   :  { %v2193_v20 = vpop.f32.mrf.mxu0 }
 0x428   :  { %v2194_v21 = vadd.f32 %v2193_v20, %v2117_v35  ;;  %v8602_v35 = vand.u32 4294901760, %v8591_v6 }
 0x429   :  { %v7646_v23 = vpop.f32.mrf.mxu0  ;;  %v2415_v24 = vpop.f32.mrf.mxu1 }
 0x42a   :  { %v2268_v25 = vadd.f32 %v2267_v17, %v2194_v21  ;;  %v3471_v17 = vsub.f32 %v3469_v4, %v3470_v14  ;;  %v3966_v19 = vsub.f32 %v8591_v6, %v8602_v35  ;;  %v3923_v21 = vsub.f32 %v3852_v16, %v8611_v18  ;;  %v4303_v23 = vpop.permute.xlu0 %4302 }
 0x42b   :  { %v2341_v27 = vpop.f32.mrf.mxu0  ;;  %v7661_v28 = vpop.f32.mrf.mxu1 }
 0x42c   :  { %v2342_v33 = vadd.f32 %v2341_v27, %v2268_v25  ;;  %v3472_v20 = vand.u32 4294901760, %v3471_v17  ;;  %v3967_v22 = vand.u32 4294901760, %v3966_v19  ;;  %v4304_v25 = vsel %vm234_vm2, %v4303_v23, 0 }
 0x42d   :  { %v7656_v36 = vpop.f32.mrf.mxu0  ;;  %v4372_v28 = vand.u32 4294901760, %v4304_v25 }
 0x42e   :  { %v2416_v37 = vadd.f32 %v2415_v24, %v2342_v33  ;;  %v3924_v24 = vand.u32 4294901760, %v3923_v21 }
 0x42f   :  { %v2487_v38 = vpop.f32.mrf.mxu0  ;;  %v4373_v33 = vsub.f32 %v4304_v25, %v4372_v28 }
 0x430   :  { %v2488_v40 = vadd.f32 %v2487_v38, %v2416_v37  ;;  %v3925_v27 = vsub.f32 %v3923_v21, %v3924_v24 }
 0x431   :  { %v7666_v41 = vpop.f32.mrf.mxu0  ;;  %v4374_v36 = vand.u32 4294901760, %v4373_v33 }
 0x432   :  { %v2492_v43 = vsel %vm234_vm2, %v2488_v40, 0 }
 0x433   :  { %v2560_v45 = vand.u32 4294901760, %v2492_v43  ;;  %v4375_v37 = vsub.f32 %v4373_v33, %v4374_v36 }
 0x435   :  { %v2561_v48 = vsub.f32 %v2492_v43, %v2560_v45  ;;  %7675 = vmatmul.mubr.f32.vlgmr.msra.gmra.mxu0 %v2560_v45  ;;  %v4376_v38 = vand.u32 4294901760, %v4375_v37 }
 0x436   :  { %7683 = vmatpush3.msk.msra.mxu0 %vm8511_vm8, %v8186_v34  ;;  %7684 = vmatprep.mubr.msk.f32.mxu0 %vm8178_vm1, %v8177_v7 }
 0x437   :  { %v2562_v49 = vand.u32 4294901760, %v2561_v48  ;;  %7692 = vmatprep.subr.mxu0 %v8177_v7 }
 0x439   :  { %7685 = vmatmul.mubr.f32.vlgmr.msra.gmra.mxu0 %v2562_v49  ;;  %v2563_v52 = vsub.f32 %v2561_v48, %v2562_v49 }
 0x43a   :  { %7693 = vmatpush3.msk.msra.mxu0 %vm8511_vm8, %v8186_v34  ;;  %7694 = vmatprep.mubr.msk.f32.mxu0 %vm8178_vm1, %v8177_v7 }
 0x43b   :  { %7702 = vmatprep.subr.mxu0 %v8177_v7  ;;  %v2564_v32 = vand.u32 4294901760, %v2563_v52 }
 0x43d   :  { %7670 = vmatmul.mubr.f32.vlgmr.msra.gmra.mxu1 %v2564_v32  ;;  %7695 = vmatmul.mubr.f32.vlgmr.msra.gmra.mxu0 %v2560_v45 }
 0x43e   :  { %7703 = vmatpush3.xpose.msra.mxu0 %v3063_v55  ;;  %7678 = vmatpush3.msra.mxu1 %v8518_v11 }
 0x43f   :  { %7679 = vmatprep.mubr.msk.f32.mxu1 %vm8178_vm1, %v8177_v7  ;;  %7704 = vmatprep.mubr.msk.f32.mxu0 %vm8178_vm1, %v8177_v7 }
 0x440   :  { %7712 = vmatprep.subr.mxu0 %v8177_v7  ;;  %7687 = vmatprep.subr.mxu1 %v8177_v7 }
 0x441   :  { %7680 = vmatmul.mubr.f32.vlgmr.msra.gmra.mxu1 %v2561_v48  ;;  %7705 = vmatmul.mubr.f32.vlgmr.msra.gmra.mxu0 %v8551_v50 }
 0x442   :  { %7713 = vmatpush3.xpose.msra.mxu0 %v8534_v29  ;;  %7688 = vmatpush3.msra.mxu1 %v8521_v12 }
 0x443   :  { %7689 = vmatprep.mubr.msk.f32.mxu1 %vm8178_vm1, %v8177_v7  ;;  %7697 = vmatprep.subr.mxu1 %v8177_v7 }
 0x444   :  { %7714 = vmatprep.mubr.msk.f32.mxu0 %vm8178_vm1, %v8177_v7  ;;  %7722 = vmatprep.subr.mxu0 %v8177_v7 }
 0x445   :  { %7690 = vmatmul.mubr.f32.vlgmr.msra.gmra.mxu1 %v2560_v45  ;;  %7715 = vmatmul.mubr.f32.vlgmr.msra.gmra.mxu0 %v3020_v59 }
 0x446   :  { %7698 = vmatpush3.xpose.msra.mxu1 %v8534_v29  ;;  %7723 = vmatpush3.xpose.msra.mxu0 %v8534_v29 }
 0x447   :  { %7699 = vmatprep.mubr.msk.f32.mxu1 %vm8178_vm1, %v8177_v7  ;;  %7707 = vmatprep.subr.mxu1 %v8177_v7 }
 0x448   :  { %7724 = vmatprep.mubr.msk.f32.mxu0 %vm8178_vm1, %v8177_v7  ;;  %7732 = vmatprep.subr.mxu0 %v8177_v7 }
 0x449   :  { %7700 = vmatmul.mubr.f32.vlgmr.msra.gmra.mxu1 %v3022_v5  ;;  %7725 = vmatmul.mubr.f32.vlgmr.msra.gmra.mxu0 %v8551_v50 }
 0x44a   :  { %7708 = vmatpush3.xpose.msra.mxu1 %v8537_v39  ;;  %7733 = vmatpush3.xpose.msra.mxu0 %v3063_v55 }
 0x44b   :  { %7709 = vmatprep.mubr.msk.f32.mxu1 %vm8178_vm1, %v8177_v7  ;;  %7717 = vmatprep.subr.mxu1 %v8177_v7 }
 0x44c   :  { %7734 = vmatprep.mubr.msk.f32.mxu0 %vm8178_vm1, %v8177_v7  ;;  %7742 = vmatprep.subr.mxu0 %v8177_v7 }
 0x44d   :  { %7710 = vmatmul.mubr.f32.vlgmr.msra.gmra.mxu1 %v3019_v53  ;;  %7735 = vmatmul.mubr.f32.vlgmr.msra.gmra.mxu0 %v8574_v63 }
 0x44e   :  { %7718 = vmatpush3.xpose.msra.mxu1 %v8541_v46  ;;  %7743 = vmatpush3.xpose.msra.mxu0 %v8534_v29 }
 0x44f   :  { %7719 = vmatprep.mubr.msk.f32.mxu1 %vm8178_vm1, %v8177_v7  ;;  %7727 = vmatprep.subr.mxu1 %v8177_v7 }
 0x450   :  { %7744 = vmatprep.mubr.msk.f32.mxu0 %vm8178_vm1, %v8177_v7  ;;  %7752 = vmatprep.subr.mxu0 %v8177_v7 }
 0x451   :  { %7720 = vmatmul.mubr.f32.vlgmr.msra.gmra.mxu1 %v8551_v50  ;;  %7745 = vmatmul.mubr.f32.vlgmr.msra.gmra.mxu0 %v3470_v14 }
 0x452   :  { %7728 = vmatpush3.xpose.msra.mxu1 %v8534_v29  ;;  %7753 = vmatpush3.xpose.msra.mxu0 %v8534_v29  ;;  %v3926_v29 = vand.u32 4294901760, %v3925_v27 }
 0x453   :  { %7729 = vmatprep.mubr.msk.f32.mxu1 %vm8178_vm1, %v8177_v7  ;;  %7737 = vmatprep.subr.mxu1 %v8177_v7 }
 0x454   :  { %7754 = vmatprep.mubr.msk.f32.mxu0 %vm8178_vm1, %v8177_v7  ;;  %7762 = vmatprep.subr.mxu0 %v8177_v7 }
 0x455   :  { %7730 = vmatmul.mubr.f32.vlgmr.msra.gmra.mxu1 %v3472_v20  ;;  %7755 = vmatmul.mubr.f32.vlgmr.msra.gmra.mxu0 %v8574_v63 }
 0x456   :  { %7738 = vmatpush3.xpose.msra.mxu1 %v8537_v39  ;;  %7763 = vmatpush3.xpose.msra.mxu0 %v3967_v22 }
 0x457   :  { %7739 = vmatprep.mubr.msk.f32.mxu1 %vm8178_vm1, %v8177_v7  ;;  %7747 = vmatprep.subr.mxu1 %v8177_v7 }
 0x458   :  { %7764 = vmatprep.mubr.msk.f32.mxu0 %vm8178_vm1, %v8177_v7  ;;  %7772 = vmatprep.subr.mxu0 %v8177_v7 }
 0x459   :  { %7740 = vmatmul.mubr.f32.vlgmr.msra.gmra.mxu1 %v3469_v4  ;;  %7765 = vmatmul.mubr.f32.vlgmr.msra.gmra.mxu0 %v8611_v18 }
 0x45a   :  { %7748 = vmatpush3.xpose.msra.mxu1 %v8541_v46  ;;  %7773 = vmatpush3.xpose.msra.mxu0 %v8579_v3 }
 0x45b   :  { %7749 = vmatprep.mubr.msk.f32.mxu1 %vm8178_vm1, %v8177_v7  ;;  %7757 = vmatprep.subr.mxu1 %v8177_v7 }
 0x45c   :  { %7774 = vmatprep.mubr.msk.f32.mxu0 %vm8178_vm1, %v8177_v7  ;;  %7782 = vmatprep.subr.mxu0 %v8177_v7 }
 0x45d   :  { %7750 = vmatmul.mubr.f32.vlgmr.msra.gmra.mxu1 %v8574_v63  ;;  %7775 = vmatmul.mubr.f32.vlgmr.msra.gmra.mxu0 %v3924_v24 }
 0x45e   :  { %7758 = vmatpush3.xpose.msra.mxu1 %v8579_v3  ;;  %7783 = vmatpush3.xpose.msra.mxu0 %v8579_v3 }
 0x45f   :  { %7759 = vmatprep.mubr.msk.f32.mxu1 %vm8178_vm1, %v8177_v7  ;;  %7767 = vmatprep.subr.mxu1 %v8177_v7 }
 0x460   :  { %7784 = vmatprep.mubr.msk.f32.mxu0 %vm8178_vm1, %v8177_v7  ;;  %7792 = vmatprep.subr.mxu0 %v8177_v7 }
 0x461   :  { %7760 = vmatmul.mubr.f32.vlgmr.msra.gmra.mxu1 %v3926_v29  ;;  %7785 = vmatmul.mubr.f32.vlgmr.msra.gmra.mxu0 %v8611_v18 }
 0x462   :  { %7768 = vmatpush3.xpose.msra.mxu1 %v8591_v6  ;;  %7793 = vmatpush3.xpose.msra.mxu0 %v3967_v22 }
 0x463   :  { %7769 = vmatprep.mubr.msk.f32.mxu1 %vm8178_vm1, %v8177_v7  ;;  %7777 = vmatprep.subr.mxu1 %v8177_v7 }
 0x464   :  { %7794 = vmatprep.mubr.msk.f32.mxu0 %vm8178_vm1, %v8177_v7  ;;  %7802 = vmatprep.subr.mxu0 %v8177_v7 }
 0x465   :  { %7770 = vmatmul.mubr.f32.vlgmr.msra.gmra.mxu1 %v3923_v21  ;;  %7795 = vmatmul.mubr.f32.vlgmr.msra.gmra.mxu0 %v4372_v28 }
 0x466   :  { %7778 = vmatpush3.xpose.msra.mxu1 %v8602_v35  ;;  %7803 = vmatpush3.xpose.msra.mxu0 %v8579_v3 }
 0x467   :  { %7779 = vmatprep.mubr.msk.f32.mxu1 %vm8178_vm1, %v8177_v7  ;;  %7787 = vmatprep.subr.mxu1 %v8177_v7 }
 0x468   :  { %7804 = vmatprep.mubr.msk.f32.mxu0 %vm8178_vm1, %v8177_v7  ;;  %7812 = vmatprep.subr.mxu0 %v8177_v7 }
 0x469   :  { %7780 = vmatmul.mubr.f32.vlgmr.msra.gmra.mxu1 %v8611_v18  ;;  %7805 = vmatmul.mubr.f32.vlgmr.msra.gmra.mxu0 %v4374_v36 }
 0x46a   :  { %7788 = vmatpush3.xpose.msra.mxu1 %v8579_v3  ;;  %7813 = vmatpush3.xpose.msra.mxu0 %v8579_v3 }
 0x46b   :  { %7789 = vmatprep.mubr.msk.f32.mxu1 %vm8178_vm1, %v8177_v7  ;;  %7797 = vmatprep.subr.mxu1 %v8177_v7 }
 0x46c   :  { %7814 = vmatprep.mubr.msk.f32.mxu0 %vm8178_vm1, %v8177_v7  ;;  %7822 = vmatprep.subr.mxu0 %v8177_v7 }
 0x46d   :  { %7790 = vmatmul.mubr.f32.vlgmr.msra.gmra.mxu1 %v4376_v38  ;;  %7815 = vmatmul.mubr.f32.vlgmr.msra.gmra.mxu0 %v4372_v28 }
 0x46e   :  { %7798 = vmatpush3.xpose.msra.mxu1 %v8591_v6  ;;  %7799 = vmatprep.mubr.msk.f32.mxu1 %vm8178_vm1, %v8177_v7 }
 0x46f   :  { %7807 = vmatprep.subr.mxu1 %v8177_v7  ;;  %7824 = vmatprep.mubr.msk.f32.mxu0 %vm8178_vm1, %v8177_v7 }
 0x471   :  { %7800 = vmatmul.mubr.f32.vlgmr.msra.gmra.mxu1 %v4373_v33 }
 0x472   :  { %7808 = vmatpush3.xpose.msra.mxu1 %v8602_v35  ;;  %7809 = vmatprep.mubr.msk.f32.mxu1 %vm8178_vm1, %v8177_v7 }
 0x473   :  { %7817 = vmatprep.subr.mxu1 %v8177_v7 }
 0x475   :  { %7810 = vmatmul.mubr.f32.vlgmr.msra.gmra.mxu1 %v4372_v28 }
 0x476   :  { %7819 = vmatprep.mubr.msk.f32.mxu1 %vm8178_vm1, %v8177_v7 }
 0x4f5   :  { %v2642_v39 = vpop.f32.mrf.mxu0 }
 0x4f7   :  { %v7676_v40 = vpop.f32.mrf.mxu0 }
 0x4f9   :  { %v2790_v41 = vpop.f32.mrf.mxu0 }
 0x4fb   :  { %v7686_v43 = vpop.f32.mrf.mxu0 }
 0x4fd   :  { %v2566_v45 = vpop.f32.mrf.mxu1  ;;  %v2936_v46 = vpop.f32.mrf.mxu0 }
 0x4fe   :  { %v2643_v49 = vadd.f32 %v2642_v39, %v2566_v45 }
 0x4ff   :  { %v7671_v47 = vpop.f32.mrf.mxu1  ;;  %v7696_v48 = vpop.f32.mrf.mxu0 }
 0x501   :  { %v2716_v50 = vpop.f32.mrf.mxu1  ;;  %v3100_v51 = vpop.f32.mrf.mxu0 }
 0x502   :  { %v2717_v52 = vadd.f32 %v2716_v50, %v2643_v49 }
 0x503   :  { %v7681_v32 = vpop.f32.mrf.mxu1  ;;  %v7706_v53 = vpop.f32.mrf.mxu0 }
 0x504   :  { %v2791_v55 = vadd.f32 %v2790_v41, %v2717_v52 }
 0x505   :  { %v2864_v57 = vpop.f32.mrf.mxu1  ;;  %v3248_v58 = vpop.f32.mrf.mxu0 }
 0x506   :  { %v2865_v59 = vadd.f32 %v2864_v57, %v2791_v55 }
 0x507   :  { %v7691_v61 = vpop.f32.mrf.mxu1  ;;  %v7716_v62 = vpop.f32.mrf.mxu0 }
 0x508   :  { %v2937_v63 = vadd.f32 %v2936_v46, %v2865_v59 }
 0x509   :  { %v3024_v1 = vpop.f32.mrf.mxu1  ;;  %v3394_v3 = vpop.f32.mrf.mxu0 }
 0x50a   :  { %v3025_v4 = vadd.f32 %v3024_v1, %v8446_v42  ;;  %v8697_v5 = vsub.f32 %v8462_v0, %v2937_v63  ;;  %v8700_v6 = vsub.f32 %v8479_v31, %v2937_v63  ;;  %v8703_v35 = vsub.f32 %v8507_v8, %v2937_v63 }
 0x50b   :  { %v7701_v10 = vpop.f32.mrf.mxu1  ;;  %v7726_v14 = vpop.f32.mrf.mxu0  ;;  %v8710_v19 = vsub.f32 %v8500_v56, %v2937_v63 }
 0x50c   :  { %v5653_v16 = vsel %vm234_vm2, %v8697_v5, -inf  ;;  %v5656_v17 = vsel %vm234_vm2, %v8700_v6, -inf  ;;  %v3101_v18 = vadd.f32 %v3100_v51, %v3025_v4  ;;  %v5662_v8 = vsel %vm234_vm2, %v8703_v35, -inf }
 0x50d   :  { %5654 = vmax.xlane.f32.xlu1 %v5653_v16  ;;  %5657 = vmax.xlane.f32.xlu0 %v5656_v17  ;;  %v3174_v0 = vpop.f32.mrf.mxu1  ;;  %v3550_v31 = vpop.f32.mrf.mxu0  ;;  %v5659_v23 = vsel %vm234_vm2, %v8710_v19, -inf }
 0x50e   :  { %v3175_v20 = vadd.f32 %v3174_v0, %v3101_v18 }
 0x50f   :  { %v7711_v21 = vpop.f32.mrf.mxu1  ;;  %v7736_v22 = vpop.f32.mrf.mxu0 }
 0x510   :  { %v3249_v24 = vadd.f32 %v3248_v58, %v3175_v20 }
 0x511   :  { %5663 = vmax.xlane.f32.xlu1 %v5662_v8  ;;  %5660 = vmax.xlane.f32.xlu0 %v5659_v23  ;;  %v3322_v25 = vpop.f32.mrf.mxu1  ;;  %v3698_v27 = vpop.f32.mrf.mxu0 }
 0x512   :  { %v3323_v56 = vadd.f32 %v3322_v25, %v3249_v24 }
 0x513   :  { %v7721_v28 = vpop.f32.mrf.mxu1  ;;  %v7746_v29 = vpop.f32.mrf.mxu0 }
 0x514   :  { %v8716_v33 = vadd.f32 %v3394_v3, %v3323_v56 }
 0x515   :  { %v3474_v36 = vpop.f32.mrf.mxu1  ;;  %v3844_v37 = vpop.f32.mrf.mxu0 }
 0x516   :  { %v4752_v38 = vmax.f32 %v8716_v33, 0.0  ;;  %v3475_v39 = vadd.f32 %v3474_v36, %v8446_v42 }
 0x517   :  { %v7731_v40 = vpop.f32.mrf.mxu1  ;;  %v7756_v41 = vpop.f32.mrf.mxu0 }
 0x518   :  { %v4753_v43 = vmul.f32 %v8465_v2, %v4752_v38  ;;  %v3551_v45 = vadd.f32 %v3550_v31, %v3475_v39 }
 0x519   :  { %v3624_v46 = vpop.f32.mrf.mxu1  ;;  %v4004_v47 = vpop.f32.mrf.mxu0 }
 0x51a   :  { %v3625_v48 = vadd.f32 %v3624_v46, %v3551_v45  ;;  %v4785_v49 = vand.u32 4294901760, %v4753_v43 }
 0x51b   :  { %v7741_v50 = vpop.f32.mrf.mxu1  ;;  %v7766_v51 = vpop.f32.mrf.mxu0 }
 0x51c   :  { %7818 = vmatpush3.msra.mxu1 %v4785_v49  ;;  %v3699_v52 = vadd.f32 %v3698_v27, %v3625_v48  ;;  %v4862_v32 = vsub.f32 %v4753_v43, %v4785_v49 }
 0x51d   :  { %v3772_v53 = vpop.f32.mrf.mxu1  ;;  %v4152_v55 = vpop.f32.mrf.mxu0  ;;  %7820 = vmatmul.mubr.f32.vlgmr.msra.gmra.mxu1 %v8472_v13  ;;  %7827 = vmatprep.subr.mxu1 %v8177_v7 }
 0x51e   :  { %v3773_v57 = vadd.f32 %v3772_v53, %v3699_v52  ;;  %7828 = vmatpush3.msra.mxu1 %v4862_v32  ;;  %7829 = vmatprep.mubr.msk.f32.mxu1 %vm8178_vm1, %v8177_v7  ;;  %v4863_v2 = vand.u32 4294901760, %v4862_v32 }
 0x51f   :  { %v7751_v58 = vpop.f32.mrf.mxu1  ;;  %v7776_v59 = vpop.f32.mrf.mxu0  ;;  %7837 = vmatprep.subr.mxu1 %v8177_v7 }
 0x520   :  { %v8726_v61 = vadd.f32 %v3844_v37, %v3773_v57  ;;  %v4864_v62 = vsub.f32 %v4862_v32, %v4863_v2 }
 0x521   :  { %v3928_v63 = vpop.f32.mrf.mxu1  ;;  %v4298_v1 = vpop.f32.mrf.mxu0  ;;  %7830 = vmatmul.mubr.f32.vlgmr.msra.gmra.mxu1 %v8454_v54 }
 0x522   :  { %v3929_v13 = vadd.f32 %v3928_v63, %v8446_v42  ;;  %7838 = vmatpush3.msra.mxu1 %v4863_v2  ;;  %v4865_v3 = vand.u32 4294901760, %v4864_v62  ;;  %7839 = vmatprep.mubr.msk.f32.mxu1 %vm8178_vm1, %v8177_v7 }
 0x523   :  { %v7761_v4 = vpop.f32.mrf.mxu1  ;;  %v7786_v10 = vpop.f32.mrf.mxu0  ;;  %7847 = vmatprep.subr.mxu1 %v8177_v7 }
 0x524   :  { %7823 = vmatpush3.msra.mxu0 %v4865_v3  ;;  %v4005_v14 = vadd.f32 %v4004_v47, %v3929_v13 }
 0x525   :  { %v4078_v16 = vpop.f32.mrf.mxu1  ;;  %v4454_v17 = vpop.f32.mrf.mxu0  ;;  %7825 = vmatmul.mubr.msk.f32.vlgmr.msra.gmra.mxu0 %vm234_vm2, %v8449_v44  ;;  %7832 = vmatprep.subr.mxu0 %v8177_v7 }
 0x526   :  { %v4079_v54 = vadd.f32 %v4078_v16, %v4005_v14  ;;  %7833 = vmatpush3.msra.mxu0 %v4785_v49  ;;  %7834 = vmatprep.mubr.msk.f32.mxu0 %vm8178_vm1, %v8177_v7 }
 0x527   :  { %v7771_v18 = vpop.f32.mrf.mxu1  ;;  %v7796_v0 = vpop.f32.mrf.mxu0  ;;  %7842 = vmatprep.subr.mxu0 %v8177_v7  ;;  %7840 = vmatmul.mubr.msk.f32.vlgmr.msra.gmra.mxu1 %vm234_vm2, %v8449_v44 }
 0x528   :  { %v4153_v31 = vadd.f32 %v4152_v55, %v4079_v54  ;;  %7848 = vmatpush3.msk.msra.mxu1 %vm8511_vm8, %v8186_v34  ;;  %7849 = vmatprep.mubr.msk.f32.mxu1 %vm8178_vm1, %v8177_v7 }
 0x529   :  { %v4226_v20 = vpop.f32.mrf.mxu1  ;;  %v4602_v21 = vpop.f32.mrf.mxu0  ;;  %7835 = vmatmul.mubr.f32.vlgmr.msra.gmra.mxu0 %v8460_v60  ;;  %7857 = vmatprep.subr.mxu1 %v8177_v7 }
 0x52a   :  { %v4227_v22 = vadd.f32 %v4226_v20, %v4153_v31  ;;  %7843 = vmatpush3.msra.mxu0 %v4785_v49  ;;  %7844 = vmatprep.mubr.msk.f32.mxu0 %vm8178_vm1, %v8177_v7 }
 0x52b   :  { %v7781_v8 = vpop.f32.mrf.mxu1  ;;  %v7806_v23 = vpop.f32.mrf.mxu0  ;;  %7852 = vmatprep.subr.mxu0 %v8177_v7 }
 0x52c   :  { %v8751_v24 = vadd.f32 %v4298_v1, %v4227_v22 }
 0x52d   :  { %v4378_v25 = vpop.f32.mrf.mxu1  ;;  %v4748_v27 = vpop.f32.mrf.mxu0  ;;  %7845 = vmatmul.mubr.msk.f32.vlgmr.msra.gmra.mxu0 %vm234_vm2, %v8449_v44 }
 0x52e   :  { %v4379_v60 = vadd.f32 %v4378_v25, %v8446_v42  ;;  %7853 = vmatpush3.msra.mxu0 %v8525_v15  ;;  %7854 = vmatprep.mubr.msk.f32.mxu0 %vm8178_vm1, %v8177_v7 }
 0x52f   :  { %v7791_v56 = vpop.f32.mrf.mxu1  ;;  %v7816_v28 = vpop.f32.mrf.mxu0  ;;  %7862 = vmatprep.subr.mxu0 %v8177_v7 }
 0x530   :  { %v4455_v29 = vadd.f32 %v4454_v17, %v4379_v60 }
 0x531   :  { %v4528_v36 = vpop.f32.mrf.mxu1 }
 0x532   :  { %v4529_v37 = vadd.f32 %v4528_v36, %v4455_v29 }
 0x533   :  { %v7801_v38 = vpop.f32.mrf.mxu1 }
 0x534   :  { %v4603_v39 = vadd.f32 %v4602_v21, %v4529_v37 }
 0x535   :  { %v4676_v40 = vpop.f32.mrf.mxu1 }
 0x536   :  { %v4677_v41 = vadd.f32 %v4676_v40, %v4603_v39 }
 0x537   :  { %v7811_v43 = vpop.f32.mrf.mxu1 }
 0x538   :  { %v8760_v44 = vadd.f32 %v4748_v27, %v4677_v41 }
 0x596   :  { %v5658_v10 = vpop.xlane.xlu0 %5657 }
 0x597   :  { %v5678_v54 = vsub.f32 %v8700_v6, %v5658_v10 }
 0x599   :  { %v5687_v23 = vmul.f32 1.442695, %v5678_v54 }
 0x59a   :  { %v5661_v0 = vpop.xlane.xlu0 %5660 }
 0x59b   :  { %v5679_v25 = vsub.f32 %v8710_v19, %v5661_v0 }
 0x59d   :  { %v5689_v6 = vmul.f32 1.442695, %v5679_v25 }
 0x5dd   :  { %v4826_v42 = vpop.f32.mrf.mxu1 }
 0x5df   :  { %v7821_v45 = vpop.f32.mrf.mxu1 }
 0x5e1   :  { %v4976_v15 = vpop.f32.mrf.mxu1 }
 0x5e3   :  { %v7831_v46 = vpop.f32.mrf.mxu1 }
 0x5e5   :  { %v4902_v47 = vpop.f32.mrf.mxu0 }
 0x5e6   :  { %v4903_v48 = vadd.f32 %v4902_v47, %v4826_v42 }
 0x5e7   :  { %v7826_v49 = vpop.f32.mrf.mxu0  ;;  %v5124_v50 = vpop.f32.mrf.mxu1 }
 0x5e8   :  { %v4977_v51 = vadd.f32 %v4976_v15, %v4903_v48 }
 0x5e9   :  { %v5050_v52 = vpop.f32.mrf.mxu0  ;;  %v7841_v32 = vpop.f32.mrf.mxu1 }
 0x5ea   :  { %v5051_v53 = vadd.f32 %v5050_v52, %v4977_v51 }
 0x5eb   :  { %v7836_v55 = vpop.f32.mrf.mxu0 }
 0x5ec   :  { %v5125_v57 = vadd.f32 %v5124_v50, %v5051_v53 }
 0x5ed   :  { %v5196_v2 = vpop.f32.mrf.mxu0 }
 0x5ee   :  { %v5197_v58 = vadd.f32 %v5196_v2, %v5125_v57 }
 0x5ef   :  { %v7846_v59 = vpop.f32.mrf.mxu0 }
 0x5f0   :  { %v5201_v62 = vsel %vm234_vm2, %v5197_v58, 0 }
 0x5f1   :  { %v5269_v63 = vand.u32 4294901760, %v5201_v62 }
 0x5f3   :  { %v5270_v1 = vsub.f32 %v5201_v62, %v5269_v63  ;;  %7855 = vmatmul.mubr.f32.vlgmr.msra.gmra.mxu0 %v5269_v63 }
 0x5f4   :  { %7863 = vmatpush3.msk.msra.mxu0 %vm8511_vm8, %v8186_v34  ;;  %7864 = vmatprep.mubr.msk.f32.mxu0 %vm8178_vm1, %v8177_v7 }
 0x5f5   :  { %v5271_v13 = vand.u32 4294901760, %v5270_v1  ;;  %7872 = vmatprep.subr.mxu0 %v8177_v7 }
 0x5f7   :  { %7865 = vmatmul.mubr.f32.vlgmr.msra.gmra.mxu0 %v5271_v13  ;;  %v5272_v3 = vsub.f32 %v5270_v1, %v5271_v13 }
 0x5f8   :  { %7873 = vmatpush3.msk.msra.mxu0 %vm8511_vm8, %v8186_v34  ;;  %7874 = vmatprep.mubr.msk.f32.mxu0 %vm8178_vm1, %v8177_v7  ;;  %v5655_v34 = vpop.xlane.xlu1 %5654 }
 0x5f9   :  { %v5273_v4 = vand.u32 4294901760, %v5272_v3  ;;  %v5677_v17 = vsub.f32 %v8697_v5, %v5655_v34 }
 0x5fb   :  { %7850 = vmatmul.mubr.f32.vlgmr.msra.gmra.mxu1 %v5273_v4  ;;  %7875 = vmatmul.mubr.f32.vlgmr.msra.gmra.mxu0 %v5269_v63  ;;  %v5685_v21 = vmul.f32 1.442695, %v5677_v17 }
 0x5fc   :  { %7858 = vmatpush3.msra.mxu1 %v8518_v11  ;;  %7859 = vmatprep.mubr.msk.f32.mxu1 %vm8178_vm1, %v8177_v7  ;;  %v5664_v18 = vpop.xlane.xlu1 %5663 }
 0x5fd   :  { %7867 = vmatprep.subr.mxu1 %v8177_v7  ;;  %8038 = vpow2.f32 %v5685_v21 }
 0x5fe   :  { %8040 = vpow2.f32 %v5687_v23 }
 0x5ff   :  { %7860 = vmatmul.mubr.f32.vlgmr.msra.gmra.mxu1 %v5270_v1 }
 0x600   :  { %7868 = vmatpush3.msra.mxu1 %v8521_v12  ;;  %7869 = vmatprep.mubr.msk.f32.mxu1 %vm8178_vm1, %v8177_v7  ;;  %v5680_v12 = vsub.f32 %v8703_v35, %v5664_v18 }
 0x602   :  { %v5691_v5 = vmul.f32 1.442695, %v5680_v12 }
 0x603   :  { %7870 = vmatmul.mubr.f32.vlgmr.msra.gmra.mxu1 %v5269_v63 }
 0x604   :  { %8042 = vpow2.f32 %v5691_v5 }
 0x605   :  { %8044 = vpow2.f32 %v5689_v6 }
 0x60a   :  { %v8791_v45 = vpop.eup %8038 }
 0x60b   :  { %v8795_v47 = vpop.eup %8040 }
 0x6b3   :  { %v5351_v9 = vpop.f32.mrf.mxu0 }
 0x6b5   :  { %v7856_v14 = vpop.f32.mrf.mxu0 }
 0x6b7   :  { %v5499_v16 = vpop.f32.mrf.mxu0 }
 0x6b9   :  { %v7866_v11 = vpop.f32.mrf.mxu0 }
 0x6bb   :  { %v5275_v31 = vpop.f32.mrf.mxu1  ;;  %v5645_v20 = vpop.f32.mrf.mxu0 }
 0x6bc   :  { %v5352_v27 = vadd.f32 %v5351_v9, %v5275_v31 }
 0x6bd   :  { %v7851_v22 = vpop.f32.mrf.mxu1  ;;  %v7876_v8 = vpop.f32.mrf.mxu0 }
 0x6bf   :  { %v5425_v60 = vpop.f32.mrf.mxu1 }
 0x6c0   :  { %v5426_v56 = vadd.f32 %v5425_v60, %v5352_v27 }
 0x6c1   :  { %v7861_v28 = vpop.f32.mrf.mxu1 }
 0x6c2   :  { %v5500_v29 = vadd.f32 %v5499_v16, %v5426_v56 }
 0x6c3   :  { %v5573_v36 = vpop.f32.mrf.mxu1 }
 0x6c4   :  { %v5574_v37 = vadd.f32 %v5573_v36, %v5500_v29 }
 0x6c5   :  { %v7871_v38 = vpop.f32.mrf.mxu1 }
 0x6c6   :  { %v5646_v35 = vadd.f32 %v5645_v20, %v5574_v37 }
 0x6c8   :  { %v5650_v39 = vsub.f32 %v8726_v61, %v5646_v35  ;;  %v5649_v40 = vsub.f32 %v8716_v33, %v5646_v35  ;;  %v5652_v43 = vsub.f32 %v8760_v44, %v5646_v35  ;;  %v5651_v42 = vsub.f32 %v8751_v24, %v5646_v35  ;;  %v8797_v33 = vpop.eup %8042 }
 0x6c9   :  { %v5701_v61 = vsel %vm234_vm2, %v8791_v45, 0.0  ;;  %v5704_v24 = vsel %vm234_vm2, %v8795_v47, 0.0  ;;  %v8803_v44 = vpop.eup %8044  ;;  %v5710_v48 = vsel %vm234_vm2, %v8797_v33, 0.0 }
 0x6ca   :  { %v5668_v19 = vsel %vm234_vm2, %v5650_v39, -inf  ;;  %v5665_v41 = vsel %vm234_vm2, %v5649_v40, -inf  ;;  %v5674_v15 = vsel %vm234_vm2, %v5652_v43, -inf  ;;  %v5671_v46 = vsel %vm234_vm2, %v5651_v42, -inf }
 0x6cb   :  { %5669 = vmax.xlane.f32.xlu1 %v5668_v19  ;;  %5666 = vmax.xlane.f32.xlu0 %v5665_v41  ;;  %v5707_v49 = vsel %vm234_vm2, %v8803_v44, 0.0 }
 0x6cf   :  { %5675 = vmax.xlane.f32.xlu1 %v5674_v15  ;;  %5672 = vmax.xlane.f32.xlu0 %v5671_v46 }
 0x6d3   :  { %5702 = vadd.xlane.f32.xlu0 %v5701_v61  ;;  %5705 = vadd.xlane.f32.xlu1 %v5704_v24 }
 0x6d7   :  { %5711 = vadd.xlane.f32.xlu1 %v5710_v48  ;;  %5708 = vadd.xlane.f32.xlu0 %v5707_v49 }
 0x6e8   :  { %5745 = vrot.lane.b32.xlu1 %v8272_v26, %s8187_s6 }
 0x6ec   :  { %6347 = vrot.lane.b32.xlu1 %v8276_v30, %s8180_s22 }
 0x6ed   :  { %5742 = vrot.lane.b32.xlu0 %v8272_v26, %s8180_s22 }
 0x6f1   :  { %5748 = vrot.lane.b32.xlu0 %v8272_v26, %s8188_s27 }
 0x754   :  { %v5670_v50 = vpop.xlane.xlu1 %5669  ;;  %v5667_v51 = vpop.xlane.xlu0 %5666 }
 0x755   :  { %v5682_v52 = vsub.f32 %v5650_v39, %v5670_v50  ;;  %v5681_v32 = vsub.f32 %v5649_v40, %v5667_v51 }
 0x757   :  { %v5695_v53 = vmul.f32 1.442695, %v5682_v52  ;;  %v5693_v55 = vmul.f32 1.442695, %v5681_v32 }
 0x758   :  { %v5676_v57 = vpop.xlane.xlu1 %5675  ;;  %v5673_v2 = vpop.xlane.xlu0 %5672 }
 0x759   :  { %8046 = vpow2.f32 %v5695_v53  ;;  %v5684_v58 = vsub.f32 %v5652_v43, %v5676_v57  ;;  %v5683_v59 = vsub.f32 %v5651_v42, %v5673_v2 }
 0x75a   :  { %8048 = vpow2.f32 %v5693_v55 }
 0x75b   :  { %v5699_v62 = vmul.f32 1.442695, %v5684_v58  ;;  %v5697_v63 = vmul.f32 1.442695, %v5683_v59 }
 0x75c   :  { %v5706_v1 = vpop.xlane.xlu1 %5705  ;;  %v5703_v13 = vpop.xlane.xlu0 %5702 }
 0x75d   :  { %8050 = vpow2.f32 %v5699_v62 }
 0x75e   :  { %8052 = vpow2.f32 %v5697_v63 }
 0x75f   :  { %8054 = vrcp.f32 %v5706_v1 }
 0x760   :  { %8056 = vrcp.f32 %v5703_v13  ;;  %v5712_v26 = vpop.xlane.xlu1 %5711  ;;  %v5709_v3 = vpop.xlane.xlu0 %5708 }
 0x761   :  { %8058 = vrcp.f32 %v5712_v26 }
 0x762   :  { %8060 = vrcp.f32 %v5709_v3 }
 0x764   :  { %v5746_v4 = vpop.permute.xlu1 %5745  ;;  %v5743_v9 = vpop.permute.xlu0 %5742 }
 0x765   :  { %v5751_v34 = vsel %vm234_vm2, %v5743_v9, %v5746_v4 }
 0x766   :  { %v8818_v10 = vpop.eup %8046  ;;  %v5753_v11 = vsel %vm5752_vm9, %v5751_v34, %v5746_v4 }
 0x767   :  { %v8820_v14 = vpop.eup %8048  ;;  %v5716_v16 = vsel %vm234_vm2, %v8818_v10, 0.0 }
 0x768   :  { %5717 = vadd.xlane.f32.xlu1 %v5716_v16  ;;  %v5713_v17 = vsel %vm234_vm2, %v8820_v14, 0.0  ;;  %v5749_v54 = vpop.permute.xlu0 %5748  ;;  %v6348_v55 = vpop.permute.xlu1 %6347 }
 0x769   :  { %5714 = vadd.xlane.f32.xlu0 %v5713_v17  ;;  %v5755_v18 = vsel %vm5754_vm10, %v5753_v11, %v5749_v54 }
 0x76a   :  { %v8828_v0 = vpop.eup %8050  ;;  %v8830_v31 = vand.u32 4294901760, %v5755_v18 }
 0x76b   :  { %v8832_v20 = vpop.eup %8052  ;;  %v5722_v21 = vsel %vm234_vm2, %v8828_v0, 0.0 }
 0x76c   :  { %v8055_v12 = vpop.eup %8054  ;;  %v5906_v22 = vsub.f32 %v5755_v18, %v8830_v31  ;;  %v5719_v8 = vsel %vm234_vm2, %v8832_v20, 0.0  ;;  %7877 = vmatprep.subr.mxu0 %v8830_v31 }
 0x76d   :  { %v8057_v23 = vpop.eup %8056  ;;  %5723 = vadd.xlane.f32.xlu0 %v5722_v21  ;;  %5720 = vadd.xlane.f32.xlu1 %v5719_v8  ;;  %v5728_v25 = vmul.f32 %v8055_v12, %v8795_v47 }
 0x76e   :  { %v8059_v27 = vpop.eup %8058  ;;  %7878 = vmatpush3.msra.mxu0 %v8830_v31  ;;  %7893 = vmatprep.subr.mxu1 %v5906_v22  ;;  %v5907_v60 = vand.u32 4294901760, %v5906_v22  ;;  %v5726_v56 = vmul.f32 %v8057_v23, %v8791_v45 }
 0x76f   :  { %v8061_v5 = vpop.eup %8060  ;;  %7894 = vmatpush3.msra.mxu1 %v5906_v22  ;;  %v5760_v28 = vsel %vm234_vm2, %v5728_v25, 0  ;;  %v5732_v6 = vmul.f32 %v8059_v27, %v8797_v33 }
 0x770   :  { %7909 = vmatprep.subr.mxu1 %v5907_v60  ;;  %v5757_v29 = vsel %vm234_vm2, %v5726_v56, 0  ;;  %v5844_v36 = vand.u32 4294901760, %v5760_v28  ;;  %v5908_v37 = vsub.f32 %v5906_v22, %v5907_v60  ;;  %v5730_v38 = vmul.f32 %v8061_v5, %v8803_v44 }
 0x771   :  { %v5834_v35 = vand.u32 4294901760, %v5757_v29  ;;  %v5766_v39 = vsel %vm234_vm2, %v5732_v6, 0 }
 0x772   :  { %v5845_v40 = vsub.f32 %v5760_v28, %v5844_v36  ;;  %v5909_v19 = vand.u32 4294901760, %v5908_v37  ;;  %v5763_v41 = vsel %vm234_vm2, %v5730_v38, 0  ;;  %v5864_v43 = vand.u32 4294901760, %v5766_v39 }
 0x773   :  { %v5835_v42 = vsub.f32 %v5757_v29, %v5834_v35  ;;  %v5854_v45 = vand.u32 4294901760, %v5763_v41 }
 0x774   :  { %7885 = vmatprep.subr.mxu0 %v5909_v19  ;;  %v5865_v15 = vsub.f32 %v5766_v39, %v5864_v43  ;;  %v5846_v46 = vand.u32 4294901760, %v5845_v40 }
 0x775   :  { %7895 = vmatprep.mubr.f32.mxu1 %v5835_v42  ;;  %v5855_v47 = vsub.f32 %v5763_v41, %v5854_v45  ;;  %v5836_v33 = vand.u32 4294901760, %v5835_v42 }
 0x776   :  { %7896 = vmatmul.mubr.f32.vlgmr.msra.gmra.mxu1 %v5845_v40  ;;  %v5847_v61 = vsub.f32 %v5845_v40, %v5846_v46  ;;  %v5866_v24 = vand.u32 4294901760, %v5865_v15 }
 0x777   :  { %7910 = vmatpush3.msra.mxu1 %v5907_v60  ;;  %7898 = vmatprep.mubr.f32.mxu1 %v5855_v47  ;;  %v5837_v44 = vsub.f32 %v5835_v42, %v5836_v33  ;;  %v5856_v48 = vand.u32 4294901760, %v5855_v47  ;;  %v8020_v42 = vld [vmem:[#allocation7 + $0x8] sm:$0xff]  }
 0x778   :  { %v5848_v49 = vand.u32 4294901760, %v5847_v61  ;;  %v5867_v50 = vsub.f32 %v5865_v15, %v5866_v24 }
 0x779   :  { %v5838_v51 = vand.u32 4294901760, %v5837_v44  ;;  %v5857_v52 = vsub.f32 %v5855_v47, %v5856_v48 }
 0x77a   :  { %7899 = vmatmul.mubr.f32.gmra.mxu1 %v5865_v15  ;;  %v5868_v53 = vand.u32 4294901760, %v5867_v50 }
 0x77b   :  { %7879 = vmatprep.mubr.f32.mxu0 %v5838_v51  ;;  %7911 = vmatprep.mubr.f32.mxu1 %v5834_v35  ;;  %v5858_v32 = vand.u32 4294901760, %v5857_v52 }
 0x77c   :  { %7880 = vmatmul.mubr.f32.vlgmr.msra.gmra.mxu0 %v5848_v49 }
 0x77d   :  { %7886 = vmatpush3.msra.mxu0 %v5909_v19  ;;  %7882 = vmatprep.mubr.f32.mxu0 %v5858_v32 }
 0x77e   :  { %7901 = vmatprep.subr.mxu0 %v8830_v31  ;;  %7912 = vmatmul.mubr.f32.vlgmr.msra.gmra.mxu1 %v5844_v36 }
 0x77f   :  { %7914 = vmatprep.mubr.f32.mxu1 %v5854_v45  ;;  %6350 = vrot.lane.b32.xlu1 %v8276_v30, %s8187_s6 }
 0x780   :  { %7883 = vmatmul.mubr.f32.gmra.mxu0 %v5868_v53 }
 0x781   :  { %7887 = vmatprep.mubr.f32.mxu0 %v5834_v35 }
 0x782   :  { %7915 = vmatmul.mubr.f32.gmra.mxu1 %v5864_v43 }
 0x783   :  { %6353 = vrot.lane.b32.xlu0 %v8276_v30, %s8188_s27 }
 0x784   :  { %7888 = vmatmul.mubr.f32.vlgmr.msra.gmra.mxu0 %v5844_v36 }
 0x785   :  { %7902 = vmatpush3.msra.mxu0 %v8830_v31  ;;  %7890 = vmatprep.mubr.f32.mxu0 %v5854_v45 }
 0x786   :  { %7917 = vmatprep.subr.mxu0 %v8830_v31 }
 0x788   :  { %7891 = vmatmul.mubr.f32.gmra.mxu0 %v5864_v43 }
 0x789   :  { %7903 = vmatprep.mubr.f32.mxu0 %v5836_v33 }
 0x78c   :  { %7904 = vmatmul.mubr.f32.vlgmr.msra.gmra.mxu0 %v5846_v46 }
 0x78d   :  { %7918 = vmatpush3.msra.mxu0 %v8830_v31  ;;  %7906 = vmatprep.mubr.f32.mxu0 %v5856_v48 }
 0x790   :  { %7907 = vmatmul.mubr.f32.gmra.mxu0 %v5866_v24 }
 0x791   :  { %7919 = vmatprep.mubr.f32.mxu0 %v5834_v35 }
 0x794   :  { %7920 = vmatmul.mubr.f32.vlgmr.msra.gmra.mxu0 %v5844_v36 }
 0x795   :  { %7922 = vmatprep.mubr.f32.mxu0 %v5854_v45  ;;  %v8021_v45 = vld [vmem:[#allocation7] sm:$0xff]  }
 0x798   :  { %7923 = vmatmul.mubr.f32.gmra.mxu0 %v5864_v43 }
 0x7f1   :  { %v5718_v57 = vpop.xlane.xlu1 %5717 }
 0x7f2   :  { %8062 = vrcp.f32 %v5718_v57  ;;  %v5715_v30 = vpop.xlane.xlu0 %5714 }
 0x7f3   :  { %8064 = vrcp.f32 %v5715_v30 }
 0x7f6   :  { %v5721_v2 = vpop.xlane.xlu1 %5720  ;;  %v5724_v58 = vpop.xlane.xlu0 %5723 }
 0x7f7   :  { %8066 = vrcp.f32 %v5721_v2 }
 0x7f8   :  { %8068 = vrcp.f32 %v5724_v58 }
 0x7fa   :  { %v6351_v59 = vpop.permute.xlu1 %6350  ;;  %v6354_v1 = vpop.permute.xlu0 %6353 }
 0x7fb   :  { %v6356_v62 = vsel %vm234_vm2, %v6348_v55, %v6351_v59 }
 0x7fc   :  { %v6357_v63 = vsel %vm5752_vm9, %v6356_v62, %v6351_v59 }
 0x7fd   :  { %v6358_v13 = vsel %vm5754_vm10, %v6357_v63, %v6354_v1 }
 0x7fe   :  { %v6402_v26 = vand.u32 4294901760, %v6358_v13 }
 0x7ff   :  { %v8063_v3 = vpop.eup %8062 }
 0x800   :  { %v8065_v4 = vpop.eup %8064  ;;  %v5736_v9 = vmul.f32 %v8063_v3, %v8818_v10  ;;  %v6509_v34 = vsub.f32 %v6358_v13, %v6402_v26  ;;  %7925 = vmatprep.subr.mxu1 %v6402_v26 }
 0x801   :  { %7926 = vmatpush3.msra.mxu1 %v6402_v26  ;;  %v5734_v16 = vmul.f32 %v8065_v4, %v8820_v14 }
 0x802   :  { %7941 = vmatprep.subr.mxu1 %v6509_v34  ;;  %v6510_v17 = vand.u32 4294901760, %v6509_v34  ;;  %v6363_v11 = vsel %vm234_vm2, %v5736_v9, 0 }
 0x803   :  { %v6360_v54 = vsel %vm234_vm2, %v5734_v16, 0  ;;  %v6447_v18 = vand.u32 4294901760, %v6363_v11 }
 0x804   :  { %v8067_v31 = vpop.eup %8066  ;;  %v6437_v21 = vand.u32 4294901760, %v6360_v54  ;;  %v6511_v12 = vsub.f32 %v6509_v34, %v6510_v17 }
 0x805   :  { %v8069_v22 = vpop.eup %8068  ;;  %v6448_v8 = vsub.f32 %v6363_v11, %v6447_v18  ;;  %v5738_v23 = vmul.f32 %v8067_v31, %v8832_v20 }
 0x806   :  { %7935 = vmatprep.mubr.f32.mxu0 %v6437_v21  ;;  %v6512_v10 = vand.u32 4294901760, %v6511_v12  ;;  %v6438_v25 = vsub.f32 %v6360_v54, %v6437_v21  ;;  %v5740_v27 = vmul.f32 %v8069_v22, %v8828_v0 }
 0x807   :  { %v6366_v14 = vsel %vm234_vm2, %v5738_v23, 0  ;;  %v6449_v60 = vand.u32 4294901760, %v6448_v8 }
 0x808   :  { %7933 = vmatprep.subr.mxu0 %v6512_v10  ;;  %v6457_v56 = vand.u32 4294901760, %v6366_v14  ;;  %v6439_v5 = vand.u32 4294901760, %v6438_v25  ;;  %v6369_v28 = vsel %vm234_vm2, %v5740_v27, 0 }
 0x809   :  { %7934 = vmatpush3.msra.mxu0 %v6512_v10  ;;  %v6467_v6 = vand.u32 4294901760, %v6369_v28  ;;  %v6450_v29 = vsub.f32 %v6448_v8, %v6449_v60 }
 0x80a   :  { %7936 = vmatmul.mubr.f32.vlgmr.msra.gmra.mxu0 %v6447_v18  ;;  %7949 = vmatprep.subr.mxu0 %v6402_v26  ;;  %v6440_v36 = vsub.f32 %v6438_v25, %v6439_v5  ;;  %v6458_v20 = vsub.f32 %v6366_v14, %v6457_v56 }
 0x80b   :  { %7938 = vmatprep.mubr.f32.mxu0 %v6457_v56  ;;  %7950 = vmatpush3.msra.mxu0 %v6402_v26  ;;  %v6451_v37 = vand.u32 4294901760, %v6450_v29  ;;  %v6468_v38 = vsub.f32 %v6369_v28, %v6467_v6 }
 0x80c   :  { %7965 = vmatprep.subr.mxu0 %v6402_v26  ;;  %v6441_v0 = vand.u32 4294901760, %v6440_v36  ;;  %v6459_v35 = vand.u32 4294901760, %v6458_v20 }
 0x80d   :  { %v6469_v39 = vand.u32 4294901760, %v6468_v38 }
 0x80e   :  { %7927 = vmatprep.mubr.f32.mxu1 %v6441_v0  ;;  %7939 = vmatmul.mubr.f32.gmra.mxu0 %v6467_v6  ;;  %v6460_v40 = vsub.f32 %v6458_v20, %v6459_v35 }
 0x80f   :  { %7928 = vmatmul.mubr.f32.vlgmr.msra.gmra.mxu1 %v6451_v37  ;;  %7951 = vmatprep.mubr.f32.mxu0 %v6439_v5  ;;  %v6470_v19 = vsub.f32 %v6468_v38, %v6469_v39 }
 0x810   :  { %7942 = vmatpush3.msra.mxu1 %v6509_v34  ;;  %v6461_v41 = vand.u32 4294901760, %v6460_v40 }
 0x811   :  { %7957 = vmatprep.subr.mxu1 %v6510_v17  ;;  %v6471_v43 = vand.u32 4294901760, %v6470_v19 }
 0x812   :  { %7930 = vmatprep.mubr.f32.mxu1 %v6461_v41  ;;  %7952 = vmatmul.mubr.f32.vlgmr.msra.gmra.mxu0 %v6449_v60 }
 0x813   :  { %7966 = vmatpush3.msra.mxu0 %v6402_v26  ;;  %7931 = vmatmul.mubr.f32.gmra.mxu1 %v6471_v43 }
 0x814   :  { %7954 = vmatprep.mubr.f32.mxu0 %v6459_v35  ;;  %7943 = vmatprep.mubr.f32.mxu1 %v6438_v25 }
 0x816   :  { %7955 = vmatmul.mubr.f32.gmra.mxu0 %v6469_v39 }
 0x817   :  { %7944 = vmatmul.mubr.f32.vlgmr.msra.gmra.mxu1 %v6448_v8  ;;  %7967 = vmatprep.mubr.f32.mxu0 %v6437_v21 }
 0x818   :  { %7958 = vmatpush3.msra.mxu1 %v6510_v17  ;;  %7946 = vmatprep.mubr.f32.mxu1 %v6458_v20 }
 0x819   :  { %7973 = vmatprep.subr.bf16.mxu1 %v8177_v7 }
 0x81a   :  { %7968 = vmatmul.mubr.f32.vlgmr.msra.gmra.mxu0 %v6447_v18 }
 0x81b   :  { %7947 = vmatmul.mubr.f32.gmra.mxu1 %v6468_v38  ;;  %7970 = vmatprep.mubr.f32.mxu0 %v6457_v56 }
 0x81c   :  { %7959 = vmatprep.mubr.f32.mxu1 %v6437_v21 }
 0x81e   :  { %7971 = vmatmul.mubr.f32.gmra.mxu0 %v6467_v6 }
 0x81f   :  { %7960 = vmatmul.mubr.f32.vlgmr.msra.gmra.mxu1 %v6447_v18 }
 0x820   :  { %7962 = vmatprep.mubr.f32.mxu1 %v6457_v56  ;;  %7974 = vmatpush3.bf16.msra.mxu1 %v8020_v42 }
 0x821   :  { %7975 = vmatprep.subr.bf16.mxu1 %v8177_v7 }
 0x823   :  { %7963 = vmatmul.mubr.f32.gmra.mxu1 %v6467_v6 }
 0x824   :  { %7977 = vmatprep.mubr.msk.bf16.mxu1 %vm8178_vm1, %v8177_v7  ;;  %7976 = vmatpush3.bf16.msra.mxu1 %v8021_v45 }
 0x825   :  { %7981 = vmatprep.subr.bf16.mxu1 %v8177_v7 }
 0x836   :  { %v7897_v51 = vpop.f32.mrf.mxu1 }
 0x838   :  { %v6038_v32 = vpop.f32.mrf.mxu1 }
 0x83a   :  { %v7900_v55 = vpop.f32.mrf.mxu1 }
 0x83c   :  { %v7881_v15 = vpop.f32.mrf.mxu0  ;;  %v6052_v30 = vpop.f32.mrf.mxu1 }
 0x83e   :  { %v5840_v46 = vpop.f32.mrf.mxu0  ;;  %v7913_v58 = vpop.f32.mrf.mxu1 }
 0x840   :  { %v7884_v47 = vpop.f32.mrf.mxu0  ;;  %v6231_v62 = vpop.f32.mrf.mxu1 }
 0x842   :  { %v5860_v33 = vpop.f32.mrf.mxu0  ;;  %v7916_v1 = vpop.f32.mrf.mxu1 }
 0x844   :  { %v7889_v61 = vpop.f32.mrf.mxu0  ;;  %v6243_v3 = vpop.f32.mrf.mxu1 }
 0x845   :  { %v5953_v22 = vadd.f32 %v7889_v61, %v7881_v15 }
 0x846   :  { %v5946_v24 = vpop.f32.mrf.mxu0 }
 0x847   :  { %v5947_v21 = vadd.f32 %v5946_v24, %v5840_v46  ;;  %v6046_v5 = vadd.f32 %v7897_v51, %v5953_v22 }
 0x848   :  { %v7892_v44 = vpop.f32.mrf.mxu0 }
 0x849   :  { %v6039_v27 = vadd.f32 %v6038_v32, %v5947_v21  ;;  %v5965_v29 = vadd.f32 %v7892_v44, %v7884_v47 }
 0x84a   :  { %v5958_v48 = vpop.f32.mrf.mxu0 }
 0x84b   :  { %v5959_v8 = vadd.f32 %v5958_v48, %v5860_v33  ;;  %v6060_v45 = vadd.f32 %v7900_v55, %v5965_v29 }
 0x84c   :  { %v7905_v49 = vpop.f32.mrf.mxu0 }
 0x84d   :  { %v6053_v28 = vadd.f32 %v6052_v30, %v5959_v8  ;;  %v6142_v0 = vadd.f32 %v7905_v49, %v6046_v5  ;;  %v8083_v8 = vld [vmem:[#allocation2 + $0x8] sm:$0xff] }
 0x84e   :  { %v6133_v50 = vpop.f32.mrf.mxu0  ;;  %v8025_v5 = vld [vmem:[%s8955_s3] ss:$8 sps:$4 sm:$0xff]  }
 0x84f   :  { %v6134_v36 = vadd.f32 %v6133_v50, %v6039_v27  ;;  %v6238_v61 = vadd.f32 %v7913_v58, %v6142_v0 }
 0x850   :  { %v7908_v52 = vpop.f32.mrf.mxu0 }
 0x851   :  { %v6232_v15 = vadd.f32 %v6231_v62, %v6134_v36  ;;  %v6158_v47 = vadd.f32 %v7908_v52, %v6060_v45 }
 0x852   :  { %v6149_v53 = vpop.f32.mrf.mxu0 }
 0x853   :  { %v6150_v35 = vadd.f32 %v6149_v53, %v6053_v28  ;;  %v6250_v62 = vadd.f32 %v7916_v1, %v6158_v47  ;;  %v8027_v28 = vld [vmem:[%s8955_s3 + $0x4] ss:$8 sps:$4 sm:$0xff]  }
 0x854   :  { %v7921_v57 = vpop.f32.mrf.mxu0 }
 0x855   :  { %v6244_v24 = vadd.f32 %v6243_v3, %v6150_v35 }
 0x856   :  { %v6321_v2 = vpop.f32.mrf.mxu0 }
 0x857   :  { %v6322_v44 = vadd.f32 %v6321_v2, %v6232_v15  ;;  %v8028_v15 = vld [vmem:[%s8956_s4 + $0x28] sm:$0xff]  }
 0x858   :  { %v8873_v59 = vpop.f32.mrf.mxu0 }
 0x859   :  { %v6340_v2 = vadd.f32 %v8873_v59, %v6250_v62 }
 0x85a   :  { %v6333_v63 = vpop.f32.mrf.mxu0 }
 0x85b   :  { %v6334_v53 = vadd.f32 %v6333_v63, %v6244_v24  ;;  %v8032_v24 = vld [vmem:[%s8956_s4 + $0x8] sm:$0xff]  }
 0x8ca   :  { %v7937_v13 = vpop.f32.mrf.mxu0 }
 0x8cc   :  { %v6549_v26 = vpop.f32.mrf.mxu0 }
 0x8ce   :  { %v7940_v4 = vpop.f32.mrf.mxu0 }
 0x8cf   :  { %v7929_v9 = vpop.f32.mrf.mxu1 }
 0x8d0   :  { %v6561_v34 = vpop.f32.mrf.mxu0  ;;  %v6556_v14 = vadd.f32 %v7937_v13, %v7929_v9  ;;  %v6328_v13 = vadd.f32 %v7921_v57, %v6238_v61  ;;  %v8031_v61 = vld [vmem:[%s8956_s4 + $0x10] sm:$0xff]  }
 0x8d1   :  { %v6443_v16 = vpop.f32.mrf.mxu1 }
 0x8d2   :  { %v7953_v17 = vpop.f32.mrf.mxu0  ;;  %v6550_v25 = vadd.f32 %v6549_v26, %v6443_v16  ;;  %v6343_v55 = vsel %vm234_vm2, %v6322_v44, %v6328_v13 }
 0x8d3   :  { %v7932_v11 = vpop.f32.mrf.mxu1  ;;  %v6344_v3 = vsel %vm5752_vm9, %v6343_v55, %v6334_v53 }
 0x8d4   :  { %v6736_v54 = vpop.f32.mrf.mxu0  ;;  %v6568_v20 = vadd.f32 %v7940_v4, %v7932_v11  ;;  %v6345_v57 = vsel %vm5754_vm10, %v6344_v3, %v6340_v2 }
 0x8d5   :  { %v6463_v18 = vpop.f32.mrf.mxu1 }
 0x8d6   :  { %v7956_v31 = vpop.f32.mrf.mxu0  ;;  %v6562_v39 = vadd.f32 %v6561_v34, %v6463_v18 }
 0x8d7   :  { %v7945_v12 = vpop.f32.mrf.mxu1 }
 0x8d8   :  { %v6752_v23 = vpop.f32.mrf.mxu0  ;;  %v6649_v37 = vadd.f32 %v7945_v12, %v6556_v14 }
 0x8d9   :  { %v6641_v10 = vpop.f32.mrf.mxu1 }
 0x8da   :  { %v7969_v60 = vpop.f32.mrf.mxu0  ;;  %v6642_v6 = vadd.f32 %v6641_v10, %v6550_v25  ;;  %v6745_v46 = vadd.f32 %v7953_v17, %v6649_v37 }
 0x8db   :  { %v7948_v56 = vpop.f32.mrf.mxu1 }
 0x8dc   :  { %v6663_v40 = vadd.f32 %v7948_v56, %v6568_v20  ;;  %v6924_v19 = vpop.f32.mrf.mxu0  ;;  %v6737_v42 = vadd.f32 %v6736_v54, %v6642_v6  ;;  %v8022_v56 = vld [vmem:[%s8955_s3 + $0x10] ss:$8 sps:$4 sm:$0xff]   ;;  %v8189_v6 = vmov 0  }
 0x8dd   :  { %v6655_v38 = vpop.f32.mrf.mxu1  ;;  %7094 = vmatprep.mubr.bf16.mxu0 %v8189_v6 }
 0x8de   :  { %v6656_v43 = vadd.f32 %v6655_v38, %v6562_v39  ;;  %v7972_v50 = vpop.f32.mrf.mxu0  ;;  %v6761_v32 = vadd.f32 %v7956_v31, %v6663_v40  ;;  %v8082_v31 = vld [vmem:[#allocation2] sm:$0xff] }
 0x8df   :  { %v7961_v41 = vpop.f32.mrf.mxu1 }
 0x8e0   :  { %v6841_v51 = vadd.f32 %v7961_v41, %v6745_v46  ;;  %v6753_v30 = vadd.f32 %v6752_v23, %v6656_v43  ;;  %v6936_v58 = vpop.f32.mrf.mxu0  ;;  %v8029_v46 = vld [vmem:[%s8956_s4 + $0x20] sm:$0xff]  }
 0x8e1   :  { %v6834_v33 = vpop.f32.mrf.mxu1 }
 0x8e2   :  { %v6835_v48 = vadd.f32 %v6834_v33, %v6737_v42  ;;  %v6931_v16 = vadd.f32 %v7969_v60, %v6841_v51  ;;  %v8024_v60 = vld [vmem:[%s8955_s3 + $0x14] ss:$8 sps:$4 sm:$0xff]  }
 0x8e3   :  { %v7964_v49 = vpop.f32.mrf.mxu1  ;;  %7074 = vmatprep.subr.bf16.mxu0 %v8024_v60  ;;  %v8030_v33 = vld [vmem:[%s8956_s4 + $0x18] sm:$0xff]  }
 0x8e4   :  { %v6925_v26 = vadd.f32 %v6924_v19, %v6835_v48  ;;  %v6853_v4 = vadd.f32 %v7964_v49, %v6761_v32  ;;  %7075 = vmatpush1.bf16.msra.mxu0 %v8022_v56  ;;  %v7277_v19 = vld [vmem:[%s8957_s5 + $0x1] ss:$0 sm:$0xff] }
 0x8e5   :  { %v6846_v9 = vpop.f32.mrf.mxu1  ;;  %7076 = vmatprep.subr.bf16.mxu0 %v8027_v28  ;;  %v8033_v48 = vld [vmem:[%s8956_s4] sm:$0xff]   ;;  %s8190_s4 = smov [#allocation8]  }
 0x8e6   :  { %v6847_v34 = vadd.f32 %v6846_v9, %v6753_v30  ;;  %v6946_v17 = vsel %vm234_vm2, %v6925_v26, %v6931_v16  ;;  %v6943_v11 = vadd.f32 %v7972_v50, %v6853_v4 }
 0x8e8   :  { %v6937_v52 = vadd.f32 %v6936_v58, %v6847_v34  ;;  %7077 = vmatpush1.bf16.msra.mxu0 %v8025_v5 }
 0x8ea   :  { %v6947_v63 = vsel %vm5752_vm9, %v6946_v17, %v6937_v52 }
 0x8eb   :  { %v6948_v54 = vsel %vm5754_vm10, %v6947_v63, %v6943_v11 }
 0x8ec   :  { %v6949_v18 = vpack.c.bf16 %v6948_v54, %v6345_v57 }
 0x8ee   :  { %7978 = vmatmul.mubr.msk.bf16.vlgmr.msra.gmra.mxu1 %vm98_vm0, %v6949_v18 }
 0x8ef   :  { %7993 = vmatprep.mubr.msk.bf16.mxu1 %vm8178_vm1, %v8177_v7  ;;  %7982 = vmatpush3.bf16.msra.mxu1 %v8028_v15 }
 0x8f0   :  { %7983 = vmatprep.subr.bf16.mxu1 %v8177_v7 }
 0x8f3   :  { %7984 = vmatpush3.bf16.msra.mxu1 %v8029_v46 }
 0x8f4   :  { %7985 = vmatprep.subr.bf16.mxu1 %v8177_v7 }
 0x8f7   :  { %7986 = vmatpush3.bf16.msra.mxu1 %v8030_v33 }
 0x8f8   :  { %7987 = vmatprep.subr.bf16.mxu1 %v8177_v7 }
 0x8fb   :  { %7988 = vmatpush3.bf16.msra.mxu1 %v8031_v61 }
 0x8fc   :  { %7989 = vmatprep.subr.bf16.mxu1 %v8177_v7 }
 0x8ff   :  { %7990 = vmatpush3.bf16.msra.mxu1 %v8032_v24 }
 0x900   :  { %7991 = vmatprep.subr.bf16.mxu1 %v8177_v7 }
 0x903   :  { %7992 = vmatpush3.bf16.msra.mxu1 %v8033_v48 }
 0x9ae   :  { %v7003_v1 = vpop.f32.mrf.mxu1 }
 0x9af   :  { %v8885_v21 = vadd.f32 %v8082_v31, %v7003_v1 }
 0x9b0   :  { %v7979_v59 = vpop.f32.mrf.mxu1 }
 0x9b1   :  { %v7012_v12 = vmul.f32 %v8885_v21, %v8885_v21 }
 0x9b2   :  { %v7006_v22 = vpop.f32.mrf.mxu1 }
 0x9b3   :  { %v8889_v23 = vadd.f32 %v8083_v8, %v7006_v22  ;;  %v7014_v10 = vsel %vm98_vm0, %v7012_v12, 0.0 }
 0x9b4   :  { %7015 = vadd.xlane.f32.xlu1 %v7014_v10  ;;  %v7980_v25 = vpop.f32.mrf.mxu1 }
 0x9b5   :  { %v7013_v27 = vmul.f32 %v8889_v23, %v8889_v23 }
 0x9b7   :  { %v7017_v14 = vsel %vm98_vm0, %v7013_v27, 0.0 }
 0x9b8   :  { %7018 = vadd.xlane.f32.xlu0 %v7017_v14 }
 0xa3d   :  { %v7016_v29 = vpop.xlane.xlu1 %7015 }
 0xa3e   :  { %v7020_v36 = vmul.f32 0.03125, %v7016_v29 }
 0xa40   :  { %v7022_v20 = vadd.f32 1e-05, %v7020_v36 }
 0xa41   :  { %v7019_v37 = vpop.xlane.xlu0 %7018 }
 0xa42   :  { %8070 = vrsqrt.f32 %v7022_v20  ;;  %v7021_v38 = vmul.f32 0.03125, %v7019_v37 }
 0xa44   :  { %v7023_v0 = vadd.f32 1e-05, %v7021_v38 }
 0xa46   :  { %8072 = vrsqrt.f32 %v7023_v0 }
 0xa4f   :  { %v8071_v35 = vpop.eup %8070 }
 0xa50   :  { %v7026_v39 = vmul.f32 %v8071_v35, %v8885_v21 }
 0xa52   :  { %v7032_v43 = vmul.f32 %v7277_v19, %v7026_v39 }
 0xa53   :  { %v8073_v40 = vpop.eup %8072 }
 0xa54   :  { %v7027_v41 = vmul.f32 %v8073_v40, %v8889_v23 }
 0xa56   :  { %v7033_v42 = vmul.f32 %v7277_v19, %v7027_v41 }
 0xa58   :  { %v7034_v45 = vpack.c.bf16 %v7033_v42, %v7032_v43 }
 0xa5a   :  { %7282 = vmatmul.mubr.msk.bf16.vlgmr.msra.gmra.mxu0 %vm98_vm0, %v7034_v45 }
 0xb1a   :  { %v7096_v47 = vpop.f32.mrf.mxu0 }
 0xb1b   :  { %7123 = vrot.lane.b32.xlu0 %v7096_v47, %s8180_s22  ;;  %v7283_v32 = vmul.f32 -1.442695, %v7096_v47 }
 0xb1c   :  { %v7098_v44 = vpop.f32.mrf.mxu0 }
 0xb1d   :  { %7125 = vrot.lane.b32.xlu1 %v7098_v44, %s8180_s22  ;;  %8074 = vpow2.f32 %v7283_v32 }
 0xb1e   :  { %v7100_v50 = vpop.f32.mrf.mxu0 }
 0xb1f   :  { %v7284_v49 = vmul.f32 -1.442695, %v7100_v50 }
 0xb20   :  { %v7102_v51 = vpop.f32.mrf.mxu0 }
 0xb21   :  { %7127 = vrot.lane.b32.xlu1 %v7100_v50, %s8180_s22  ;;  %7129 = vrot.lane.b32.xlu0 %v7102_v51, %s8180_s22  ;;  %8076 = vpow2.f32 %v7284_v49  ;;  %s7240_s22 = sshll.u32 %s8190_s4, 4  ;;  %s7241_s22 = int_to_ptr.vmem [resolvable:$true] %s7240_s22 }
 0xb22   :  { %s8144_s10 = scalar_lea.vmem %s7241_s22, 256  ;;  %p8149_p2 = scmp.lt.s32.totalorder %s7241_s22, %s7241_s22 }
 0xb23   :  { %p8145_p1 = scmp.ne.s32.totalorder %s7241_s22, %s8144_s10  ;;  %p8150_p3 = scmp.lt.s32.totalorder %s8144_s10, %s8144_s10 }
 0xb25   :  { %p8151_p4 = por %p8150_p3, %p8149_p2 }
 0xb27   :  { %p8152_p5 = pnand %p8151_p4, %p8145_p1 }
 0xb2a   :  { %v8075_v7 = vpop.eup %8074 }
 0xb2b   :  { %v7111_v30 = vadd.f32 1.0, %v8075_v7 }
 0xb2d   :  { %8078 = vrcp.f32 %v7111_v30 }
 0xb2e   :  { %v8077_v53 = vpop.eup %8076 }
 0xb2f   :  { %v7112_v13 = vadd.f32 1.0, %v8077_v53 }
 0xb31   :  { %8080 = vrcp.f32 %v7112_v13 }
 0xb3a   :  { %v8079_v26 = vpop.eup %8078 }
 0xb3b   :  { %v7117_v62 = vmul.f32 %v8079_v26, %v7096_v47 }
 0xb3e   :  { %v8081_v34 = vpop.eup %8080 }
 0xb3f   :  { %v7118_v16 = vmul.f32 %v8081_v34, %v7100_v50 }
 0xb8d   :  { %v7124_v4 = vpop.permute.xlu0 %7123 }
 0xb8f   :  { %v7126_v9 = vpop.permute.xlu1 %7125 }
 0xb90   :  { %v7131_v55 = vsel %vm98_vm0, %v7124_v4, %v7126_v9 }
 0xb91   :  { %v7135_v2 = vmul.f32 %v7131_v55, %v7117_v62 }
 0xb93   :  { %v7128_v58 = vpop.permute.xlu1 %7127  ;;  %v7130_v3 = vpop.permute.xlu0 %7129 }
 0xb94   :  { %v7132_v52 = vsel %vm98_vm0, %v7128_v58, %v7130_v3 }
 0xb95   :  { %v7136_v17 = vmul.f32 %v7132_v52, %v7118_v16 }
 0xb97   :  { %v7137_v11 = vpack.c.bf16 %v7136_v17, %v7135_v2 }
 0xb99   :  { %7994 = vmatmul.mubr.msk.bf16.vlgmr.msra.gmra.mxu1 %vm7186_vm11, %v7137_v11 }
 0xc59   :  { %v7224_v63 = vpop.f32.mrf.mxu1 }
 0xc5a   :  { %v7231_v57 = vadd.f32 %v7224_v63, %v8885_v21 }
 0xc5b   :  { %v7995_v54 = vpop.f32.mrf.mxu1 }
 0xc5c   :  { %7233 = vst.msk [vmem:[#allocation8] sm:$0xff] %vm98_vm0, %v7231_v57 }
 0xc5d   :  { %v7227_v18 = vpop.f32.mrf.mxu1 }
 0xc5e   :  { %v7232_v1 = vadd.f32 %v7227_v18, %v8889_v23 }
 0xc5f   :  { %v7996_v31 = vpop.f32.mrf.mxu1 }
 0xc60   :  { %7234 = vst.msk [vmem:[#allocation8 + $0x8] sm:$0xff] %vm98_vm0, %v7232_v1 }
 0xc61   :  { %8155 = shalt.err (!%p8152_p5)
}
 0xc62   :  { %7246 = dma.vmem_to_hbm [thread:$0]  %s7241_s22, 256, %s8959_s7, [#allocation4], %s8174_s11, %s8174_s11, %s8175_s12  }
 0xc63   :  { %8168 = dma.done.wait [#allocation4], 256  }
 0xc64   :  { %8169 = vsyncadd [#allocation4], 4294967040 }
 0xc65   :  { %7250 = vsyncpa [#allocation3], 1 }
 0xc66   :  { %7251 = vsyncpa [#allocation6], 1 }
 0xc67   :  { %7252 = vsyncpa [#allocation4], 1 }

</bundles_post_ra>
